<compile_context>
chip_gen: v7x
topology: tpu7x:2x2x1
jax: 0.10.0
libtpu: 0.0.40
codegen_flags: <defaults>
</compile_context>

<pallas_src>
import functools

import jax
import jax.numpy as jnp
import numpy as np
from jax.experimental import pallas as pl
from jax.experimental.pallas import tpu as pltpu


C_LATENT = 4       # latent channels (z: N x 4 x 16 x 16)
C_HIDDEN = 32      # hidden conv channels
EMB_DIM = 32       # timestep / class embedding dim
NUM_CLASSES = 10


# ------------------------------ Pallas kernel ------------------------------- #

def _fused_denoise_kernel(z_ref, w1_ref, w2_ref, side_ref, o_ref,
                          slab1_ref, slab2_ref, *, W, Cin, Cmid, Cout):
    """Fused conv3x3 -> FiLM -> SiLU -> conv3x3 -> +bias -> +residual.

    z_ref    : (Cin, L) f32    latents, batch folded along lanes (L = Nb*H*W)
    w1_ref   : (Cmid, 9*Cin)  bf16  tap-major packed conv1 weights
    w2_ref   : (Cout, 9*Cmid) bf16  tap-major packed conv2 weights
    side_ref : (2*Cmid+Cout+9, L) f32  [eff_scale; eff_bias; b2; 9 tap masks]
    o_ref    : (Cout, L) f32
    slab1_ref: VMEM (9*Cin, L)  f32   in-kernel im2col of z
    slab2_ref: VMEM (9*Cmid, L) bf16  in-kernel im2col of h
    """
    L = z_ref.shape[1]
    mask0 = 2 * Cmid + Cout                     # first tap-mask row in side buf

    z = z_ref[...]                              # (Cin, L) f32 (also residual)

    # ---- in-kernel im2col of z: 9 lane rolls (XLU) + one mask-mul each ----
    for k in range(9):                          # static, unrolled
        ky, kx = divmod(k, 3)
        off = (ky - 1) * W + (kx - 1)
        shifted = z if off == 0 else pltpu.roll(z, (-off) % L, axis=1)
        piece = shifted * side_ref[mask0 + k:mask0 + k + 1, :]
        slab1_ref[k * Cin:(k + 1) * Cin, :] = piece

    # ---- conv1 as one MXU matmul, FiLM (conv1 bias folded in host glue) ----
    acc1 = jnp.dot(w1_ref[...], slab1_ref[...].astype(jnp.bfloat16),
                   preferred_element_type=jnp.float32)        # (Cmid, L) f32
    u = acc1 * side_ref[0:Cmid, :] + side_ref[Cmid:2 * Cmid, :]

    # Sign-stable SiLU: u * sigmoid(u); exp(-|u|) never overflows, reciprocal
    # rides the EUP slot.
    e = jnp.exp(-jnp.abs(u))
    sig = pl.reciprocal(1.0 + e, approx=True)                 # sigmoid(|u|)
    h = u * jnp.where(u >= 0.0, sig, 1.0 - sig)               # (Cmid, L) f32

    # ---- in-kernel im2col of h -> bf16 scratch (32-row aligned stores) ----
    for k in range(9):
        ky, kx = divmod(k, 3)
        off = (ky - 1) * W + (kx - 1)
        shifted = h if off == 0 else pltpu.roll(h, (-off) % L, axis=1)
        piece = shifted * side_ref[mask0 + k:mask0 + k + 1, :]
        slab2_ref[k * Cmid:(k + 1) * Cmid, :] = piece.astype(jnp.bfloat16)

    # ---- conv2 as one MXU matmul (K = 9*Cmid), bias, f32 residual ----
    acc2 = jnp.dot(w2_ref[...], slab2_ref[...],
                   preferred_element_type=jnp.float32)        # (Cout, L)
    o_ref[...] = (acc2 + side_ref[2 * Cmid:2 * Cmid + Cout, :] + z
                  ).astype(o_ref.dtype)


# ------------------------------ Pallas wrapper ------------------------------ #

def _tap_masks(H, W):
    """(9, H*W) f32 validity masks for the 3x3 taps of a SAME-padded conv."""
    yy, xx = np.meshgrid(np.arange(H), np.arange(W), indexing="ij")
    rows = []
    for k in range(9):
        ky, kx = divmod(k, 3)
        dy, dx = ky - 1, kx - 1
        valid = ((xx + dx >= 0) & (xx + dx < W)
                 & (yy + dy >= 0) & (yy + dy < H))
        rows.append(valid.reshape(-1))
    return jnp.asarray(np.stack(rows, 0).astype(np.float32))


def fused_denoise(z, w1, w2, b2, eff_scale, eff_bias, *, batch_block=None):
    """z: (N,Cin,H,W); w1: (Cmid,Cin,3,3); w2: (Cout,Cmid,3,3); b2: (Cout,);
    eff_scale/eff_bias: (N, Cmid) FiLM affine with conv1 bias pre-folded."""
    N, Cin, H, W = z.shape
    Cmid = w1.shape[0]
    Cout = w2.shape[0]
    assert Cout == Cin, "residual add requires Cout == Cin"
    HW = H * W
    # Default: fold the whole batch into lanes -> one grid step (best on
    # single-TC v5e/v6e).  On v7x with larger N, pass batch_block = N // 2 so
    # the "parallel" grid axis shards across the two TensorCores.
    if batch_block is None:
        batch_block = N
    assert N % batch_block == 0
    G = N // batch_block
    L = N * HW
    Lb = batch_block * HW

    # z channel-major with batch folded along lanes: (Cin, N*HW) f32.
    z2d = z.transpose(1, 0, 2, 3).reshape(Cin, L).astype(jnp.float32)

    # Tap-major packed conv weights, bf16 for the MXU.
    w1p = w1.transpose(0, 2, 3, 1).reshape(Cmid, 9 * Cin).astype(jnp.bfloat16)
    w2p = w2.transpose(0, 2, 3, 1).reshape(Cout, 9 * Cmid).astype(jnp.bfloat16)

    # One lane-dense f32 side buffer (single DMA):
    #   rows [0, Cmid)               FiLM eff_scale (per-image broadcast)
    #   rows [Cmid, 2*Cmid)          FiLM eff_bias  (conv1 bias folded in)
    #   rows [2*Cmid, 2*Cmid+Cout)   conv2 bias
    #   rows [2*Cmid+Cout, +9)       3x3 boundary tap masks (shared by both convs)
    film_scale = jnp.broadcast_to(eff_scale.T[:, :, None],
                                  (Cmid, N, HW)).reshape(Cmid, L)
    film_bias = jnp.broadcast_to(eff_bias.T[:, :, None],
                                 (Cmid, N, HW)).reshape(Cmid, L)
    b2_rows = jnp.broadcast_to(b2[:, None], (Cout, L))
    masks = jnp.tile(_tap_masks(H, W), (1, N))                # (9, L)
    side = jnp.concatenate([film_scale, film_bias, b2_rows, masks],
                           axis=0).astype(jnp.float32)
    side_rows = side.shape[0]

    kern = functools.partial(_fused_denoise_kernel, W=W,
                             Cin=Cin, Cmid=Cmid, Cout=Cout)
    out = pl.pallas_call(
        kern,
        out_shape=jax.ShapeDtypeStruct((Cout, L), jnp.float32),
        grid_spec=pltpu.PrefetchScalarGridSpec(
            num_scalar_prefetch=0,
            grid=(G,),
            in_specs=[
                pl.BlockSpec((Cin, Lb), lambda i: (0, i)),
                pl.BlockSpec((Cmid, 9 * Cin), lambda i: (0, 0)),
                pl.BlockSpec((Cout, 9 * Cmid), lambda i: (0, 0)),
                pl.BlockSpec((side_rows, Lb), lambda i: (0, i)),
            ],
            out_specs=pl.BlockSpec((Cout, Lb), lambda i: (0, i)),
            scratch_shapes=[
                pltpu.VMEM((9 * Cin, Lb), jnp.float32),       # conv1 im2col
                pltpu.VMEM((9 * Cmid, Lb), jnp.bfloat16),     # conv2 im2col
            ],
        ),
        compiler_params=pltpu.CompilerParams(
            dimension_semantics=("parallel",)),
    )(z2d, w1p, w2p, side)

    return out.reshape(Cout, N, H, W).transpose(1, 0, 2, 3)


# --------------------------- synthetic latent DM ---------------------------- #

def _init_params():
    key = jax.random.PRNGKey(42)
    ks = jax.random.split(key, 6)
    return {
        "w1": jax.random.normal(ks[0], (C_HIDDEN, C_LATENT, 3, 3), jnp.float32)
              * (1.0 / jnp.sqrt(9.0 * C_LATENT)),
        "b1": jnp.zeros((C_HIDDEN,), jnp.float32),
        "w2": jax.random.normal(ks[1], (C_LATENT, C_HIDDEN, 3, 3), jnp.float32)
              * (1.0 / jnp.sqrt(9.0 * C_HIDDEN)),
        "b2": jnp.zeros((C_LATENT,), jnp.float32),
        "wt1": jax.random.normal(ks[2], (EMB_DIM, EMB_DIM), jnp.float32)
               * (1.0 / jnp.sqrt(EMB_DIM)),
        "bt1": jnp.zeros((EMB_DIM,), jnp.float32),
        "wt2": jax.random.normal(ks[3], (EMB_DIM, 2 * C_HIDDEN), jnp.float32)
               * (1.0 / jnp.sqrt(EMB_DIM)),
        "bt2": jnp.zeros((2 * C_HIDDEN,), jnp.float32),
        "cls_emb": jax.random.normal(ks[4], (NUM_CLASSES, EMB_DIM), jnp.float32) * 0.1,
    }


def _timestep_embedding(t, dim):
    half = dim // 2
    freqs = jnp.exp(-jnp.log(10000.0) * jnp.arange(half, dtype=jnp.float32) / half)
    args = t.astype(jnp.float32)[:, None] * freqs[None, :]
    return jnp.concatenate([jnp.cos(args), jnp.sin(args)], axis=-1)  # (N, dim)


def _conditioning(params, t, class_labels):
    """Tiny (N,32) conditioning MLP -> FiLM affine with conv1 bias folded in."""
    emb = _timestep_embedding(t, EMB_DIM)
    emb = jax.nn.silu(emb @ params["wt1"] + params["bt1"])
    if class_labels is not None:
        emb = emb + params["cls_emb"][class_labels]
    film = emb @ params["wt2"] + params["bt2"]                 # (N, 2*CH)
    scale, shift = jnp.split(film, 2, axis=-1)                 # (N, CH) each
    eff_scale = 1.0 + scale
    eff_bias = eff_scale * params["b1"][None, :] + shift       # b1*(1+s)+shift
    return eff_scale, eff_bias


def _apply_model(params, z, t, class_labels):
    """Synthetic `model.apply_model(z, t, class_labels)` -> eps, same shape as z."""
    eff_scale, eff_bias = _conditioning(params, t, class_labels)
    return fused_denoise(z, params["w1"], params["w2"], params["b2"],
                         eff_scale, eff_bias)


def _reference_apply_model(params, z, t, class_labels):
    """Pure-JAX f32 reference (no Pallas) for correctness checking."""
    eff_scale, eff_bias = _conditioning(params, t, class_labels)

    def conv3x3(x, w):
        return jax.lax.conv_general_dilated(
            x, w, window_strides=(1, 1), padding="SAME",
            dimension_numbers=("NCHW", "OIHW", "NCHW"))

    u = (conv3x3(z, params["w1"]) * eff_scale[:, :, None, None]
         + eff_bias[:, :, None, None])
    h = u * jax.nn.sigmoid(u)
    return conv3x3(h, params["w2"]) + params["b2"][None, :, None, None] + z


class LatentDMWrapper:
    """JAX/Pallas port of model/precond.py::LatentDMWrapper (forward pass)."""

    def __init__(self, params):
        self.params = params
        self._fwd = jax.jit(_apply_model)

    def forward(self, z, t, class_labels=None):
        return self._fwd(self.params, z, t, class_labels)

    def __call__(self, z, t, class_labels=None):
        return self.forward(z, t, class_labels)

    # TODO(synk): decode/encode/get_condition delegate to the unspecified
    # first-stage autoencoder / conditioning model; not reproducible here.


# ----------------------------------- main ----------------------------------- #

if __name__ == "__main__":
    key = jax.random.PRNGKey(0)
    kz, _ = jax.random.split(key)
    N, C, H, W = 2, C_LATENT, 16, 16
    z = jax.random.normal(kz, (N, C, H, W), jnp.float32)
    t = jnp.array([10.0, 500.0], jnp.float32)
    class_labels = jnp.array([3, 7], jnp.int32)

    params = _init_params()
    model = LatentDMWrapper(params)
    eps = jax.block_until_ready(model(z, t, class_labels))

    assert eps.shape == z.shape and eps.dtype == jnp.float32
    assert bool(jnp.all(jnp.isfinite(eps)))

    # Correctness vs f32 reference. Kernel uses bf16 MXU operands + an approx
    # EUP reciprocal, so use a combined abs/rel tolerance (much tighter than
    # the previous flat 0.1).
    eps_ref = _reference_apply_model(params, z, t, class_labels)
    err = jnp.abs(eps - eps_ref)
    tol = 2e-2 + 2e-2 * jnp.abs(eps_ref)
    max_err = float(jnp.max(err))
    assert bool(jnp.all(err <= tol)), f"max abs error vs reference: {max_err}"

    print("KERNEL_OK")
</pallas_src>

<mosaic_0001>
module attributes {stable_mosaic.version = 11 : i64} {
  func.func @_fused_denoise_kernel(%arg0: i32, %arg1: memref<4x512xf32, #tpu.memory_space<vmem>>, %arg2: memref<32x36xbf16, #tpu.memory_space<vmem>>, %arg3: memref<4x288xbf16, #tpu.memory_space<vmem>>, %arg4: memref<77x512xf32, #tpu.memory_space<vmem>>, %arg5: memref<4x512xf32, #tpu.memory_space<vmem>>, %arg6: memref<36x512xf32, #tpu.memory_space<vmem>>, %arg7: memref<288x512xbf16, #tpu.memory_space<vmem>>) attributes {dimension_semantics = [#tpu.dimension_semantics<parallel>], iteration_bounds = array<i64: 1>, scalar_prefetch = 0 : i64, scratch_operands = 2 : i64, tpu.core_type = #tpu.core_type<tc>, window_params = [{transform_indices = @transform_0, window_bounds = array<i64: 4, 512>}, {pipeline_mode = #tpu.pipeline_mode<synchronous>, transform_indices = @transform_1, window_bounds = array<i64: 32, 36>}, {pipeline_mode = #tpu.pipeline_mode<synchronous>, transform_indices = @transform_2, window_bounds = array<i64: 4, 288>}, {transform_indices = @transform_3, window_bounds = array<i64: 77, 512>}, {transform_indices = @transform_4, window_bounds = array<i64: 4, 512>}]} {
    %c0 = arith.constant 0 : index
    %c0_0 = arith.constant 0 : index
    %0 = vector.load %arg1[%c0, %c0_0] : memref<4x512xf32, #tpu.memory_space<vmem>>, vector<4x512xf32>
    %c17_i32 = arith.constant 17 : i32
    %1 = tpu.dynamic_rotate %0 by %c17_i32 dim 1 : vector<4x512xf32>, i32 -> vector<4x512xf32>
    %c68 = arith.constant 68 : index
    %c0_1 = arith.constant 0 : index
    %2 = vector.load %arg4[%c68, %c0_1] : memref<77x512xf32, #tpu.memory_space<vmem>>, vector<1x512xf32>
    %3 = vector.broadcast %2 : vector<1x512xf32> to vector<4x512xf32>
    %4 = arith.mulf %1, %3 : vector<4x512xf32>
    %c0_2 = arith.constant 0 : index
    %c0_3 = arith.constant 0 : index
    %5 = vector.load %arg6[%c0_2, %c0_3] : memref<36x512xf32, #tpu.memory_space<vmem>>, vector<4x512xf32>
    tpu.vector_store %arg6[%c0_2, %c0_3], %4 {strides = array<i32>} : memref<36x512xf32, #tpu.memory_space<vmem>>, vector<4x512xf32>,
    %c16_i32 = arith.constant 16 : i32
    %6 = tpu.dynamic_rotate %0 by %c16_i32 dim 1 : vector<4x512xf32>, i32 -> vector<4x512xf32>
    %c69 = arith.constant 69 : index
    %c0_4 = arith.constant 0 : index
    %7 = vector.load %arg4[%c69, %c0_4] : memref<77x512xf32, #tpu.memory_space<vmem>>, vector<1x512xf32>
    %8 = vector.broadcast %7 : vector<1x512xf32> to vector<4x512xf32>
    %9 = arith.mulf %6, %8 : vector<4x512xf32>
    %c4 = arith.constant 4 : index
    %c0_5 = arith.constant 0 : index
    %10 = vector.load %arg6[%c4, %c0_5] : memref<36x512xf32, #tpu.memory_space<vmem>>, vector<4x512xf32>
    tpu.vector_store %arg6[%c4, %c0_5], %9 {strides = array<i32>} : memref<36x512xf32, #tpu.memory_space<vmem>>, vector<4x512xf32>,
    %c15_i32 = arith.constant 15 : i32
    %11 = tpu.dynamic_rotate %0 by %c15_i32 dim 1 : vector<4x512xf32>, i32 -> vector<4x512xf32>
    %c70 = arith.constant 70 : index
    %c0_6 = arith.constant 0 : index
    %12 = vector.load %arg4[%c70, %c0_6] : memref<77x512xf32, #tpu.memory_space<vmem>>, vector<1x512xf32>
    %13 = vector.broadcast %12 : vector<1x512xf32> to vector<4x512xf32>
    %14 = arith.mulf %11, %13 : vector<4x512xf32>
    %c8 = arith.constant 8 : index
    %c0_7 = arith.constant 0 : index
    %15 = vector.load %arg6[%c8, %c0_7] : memref<36x512xf32, #tpu.memory_space<vmem>>, vector<4x512xf32>
    tpu.vector_store %arg6[%c8, %c0_7], %14 {strides = array<i32>} : memref<36x512xf32, #tpu.memory_space<vmem>>, vector<4x512xf32>,
    %c1_i32 = arith.constant 1 : i32
    %16 = tpu.dynamic_rotate %0 by %c1_i32 dim 1 : vector<4x512xf32>, i32 -> vector<4x512xf32>
    %c71 = arith.constant 71 : index
    %c0_8 = arith.constant 0 : index
    %17 = vector.load %arg4[%c71, %c0_8] : memref<77x512xf32, #tpu.memory_space<vmem>>, vector<1x512xf32>
    %18 = vector.broadcast %17 : vector<1x512xf32> to vector<4x512xf32>
    %19 = arith.mulf %16, %18 : vector<4x512xf32>
    %c12 = arith.constant 12 : index
    %c0_9 = arith.constant 0 : index
    %20 = vector.load %arg6[%c12, %c0_9] : memref<36x512xf32, #tpu.memory_space<vmem>>, vector<4x512xf32>
    tpu.vector_store %arg6[%c12, %c0_9], %19 {strides = array<i32>} : memref<36x512xf32, #tpu.memory_space<vmem>>, vector<4x512xf32>,
    %c72 = arith.constant 72 : index
    %c0_10 = arith.constant 0 : index
    %21 = vector.load %arg4[%c72, %c0_10] : memref<77x512xf32, #tpu.memory_space<vmem>>, vector<1x512xf32>
    %22 = vector.broadcast %21 : vector<1x512xf32> to vector<4x512xf32>
    %23 = arith.mulf %0, %22 : vector<4x512xf32>
    %c16 = arith.constant 16 : index
    %c0_11 = arith.constant 0 : index
    %24 = vector.load %arg6[%c16, %c0_11] : memref<36x512xf32, #tpu.memory_space<vmem>>, vector<4x512xf32>
    tpu.vector_store %arg6[%c16, %c0_11], %23 {strides = array<i32>} : memref<36x512xf32, #tpu.memory_space<vmem>>, vector<4x512xf32>,
    %c511_i32 = arith.constant 511 : i32
    %25 = tpu.dynamic_rotate %0 by %c511_i32 dim 1 : vector<4x512xf32>, i32 -> vector<4x512xf32>
    %c73 = arith.constant 73 : index
    %c0_12 = arith.constant 0 : index
    %26 = vector.load %arg4[%c73, %c0_12] : memref<77x512xf32, #tpu.memory_space<vmem>>, vector<1x512xf32>
    %27 = vector.broadcast %26 : vector<1x512xf32> to vector<4x512xf32>
    %28 = arith.mulf %25, %27 : vector<4x512xf32>
    %c20 = arith.constant 20 : index
    %c0_13 = arith.constant 0 : index
    %29 = vector.load %arg6[%c20, %c0_13] : memref<36x512xf32, #tpu.memory_space<vmem>>, vector<4x512xf32>
    tpu.vector_store %arg6[%c20, %c0_13], %28 {strides = array<i32>} : memref<36x512xf32, #tpu.memory_space<vmem>>, vector<4x512xf32>,
    %c497_i32 = arith.constant 497 : i32
    %30 = tpu.dynamic_rotate %0 by %c497_i32 dim 1 : vector<4x512xf32>, i32 -> vector<4x512xf32>
    %c74 = arith.constant 74 : index
    %c0_14 = arith.constant 0 : index
    %31 = vector.load %arg4[%c74, %c0_14] : memref<77x512xf32, #tpu.memory_space<vmem>>, vector<1x512xf32>
    %32 = vector.broadcast %31 : vector<1x512xf32> to vector<4x512xf32>
    %33 = arith.mulf %30, %32 : vector<4x512xf32>
    %c24 = arith.constant 24 : index
    %c0_15 = arith.constant 0 : index
    %34 = vector.load %arg6[%c24, %c0_15] : memref<36x512xf32, #tpu.memory_space<vmem>>, vector<4x512xf32>
    tpu.vector_store %arg6[%c24, %c0_15], %33 {strides = array<i32>} : memref<36x512xf32, #tpu.memory_space<vmem>>, vector<4x512xf32>,
    %c496_i32 = arith.constant 496 : i32
    %35 = tpu.dynamic_rotate %0 by %c496_i32 dim 1 : vector<4x512xf32>, i32 -> vector<4x512xf32>
    %c75 = arith.constant 75 : index
    %c0_16 = arith.constant 0 : index
    %36 = vector.load %arg4[%c75, %c0_16] : memref<77x512xf32, #tpu.memory_space<vmem>>, vector<1x512xf32>
    %37 = vector.broadcast %36 : vector<1x512xf32> to vector<4x512xf32>
    %38 = arith.mulf %35, %37 : vector<4x512xf32>
    %c28 = arith.constant 28 : index
    %c0_17 = arith.constant 0 : index
    %39 = vector.load %arg6[%c28, %c0_17] : memref<36x512xf32, #tpu.memory_space<vmem>>, vector<4x512xf32>
    tpu.vector_store %arg6[%c28, %c0_17], %38 {strides = array<i32>} : memref<36x512xf32, #tpu.memory_space<vmem>>, vector<4x512xf32>,
    %c495_i32 = arith.constant 495 : i32
    %40 = tpu.dynamic_rotate %0 by %c495_i32 dim 1 : vector<4x512xf32>, i32 -> vector<4x512xf32>
    %c76 = arith.constant 76 : index
    %c0_18 = arith.constant 0 : index
    %41 = vector.load %arg4[%c76, %c0_18] : memref<77x512xf32, #tpu.memory_space<vmem>>, vector<1x512xf32>
    %42 = vector.broadcast %41 : vector<1x512xf32> to vector<4x512xf32>
    %43 = arith.mulf %40, %42 : vector<4x512xf32>
    %c32 = arith.constant 32 : index
    %c0_19 = arith.constant 0 : index
    %44 = vector.load %arg6[%c32, %c0_19] : memref<36x512xf32, #tpu.memory_space<vmem>>, vector<4x512xf32>
    tpu.vector_store %arg6[%c32, %c0_19], %43 {strides = array<i32>} : memref<36x512xf32, #tpu.memory_space<vmem>>, vector<4x512xf32>,
    %c0_20 = arith.constant 0 : index
    %c0_21 = arith.constant 0 : index
    %45 = vector.load %arg2[%c0_20, %c0_21] : memref<32x36xbf16, #tpu.memory_space<vmem>>, vector<32x36xbf16>
    %c0_22 = arith.constant 0 : index
    %c0_23 = arith.constant 0 : index
    %46 = vector.load %arg6[%c0_22, %c0_23] : memref<36x512xf32, #tpu.memory_space<vmem>>, vector<36x512xf32>
    %47 = arith.truncf %46 : vector<36x512xf32> to vector<36x512xbf16>
    %cst = arith.constant dense<0.000000e+00> : vector<32x512xf32>
    %48 = tpu.matmul %45, %47, %cst {dimension_numbers = #tpu.dot_dimension_numbers<[1], [0], [0], [1], [0, 0, 1, 1], [], []>} : vector<32x36xbf16>, vector<36x512xbf16>, vector<32x512xf32> -> vector<32x512xf32>
    %c0_24 = arith.constant 0 : index
    %c0_25 = arith.constant 0 : index
    %49 = vector.load %arg4[%c0_24, %c0_25] : memref<77x512xf32, #tpu.memory_space<vmem>>, vector<32x512xf32>
    %50 = arith.mulf %48, %49 : vector<32x512xf32>
    %c32_26 = arith.constant 32 : index
    %c0_27 = arith.constant 0 : index
    %51 = vector.load %arg4[%c32_26, %c0_27] : memref<77x512xf32, #tpu.memory_space<vmem>>, vector<32x512xf32>
    %52 = arith.addf %50, %51 : vector<32x512xf32>
    %53 = math.absf %52 : vector<32x512xf32>
    %cst_28 = arith.constant 0.000000e+00 : f32
    %54 = vector.broadcast %cst_28 : f32 to vector<32x512xf32>
    %55 = arith.subf %54, %53 : vector<32x512xf32>
    %56 = math.exp %55 : vector<32x512xf32>
    %cst_29 = arith.constant 1.000000e+00 : f32
    %57 = vector.broadcast %cst_29 : f32 to vector<32x512xf32>
    %58 = arith.addf %57, %56 : vector<32x512xf32>
    %59 = tpu.reciprocal %58 {approx = true} : vector<32x512xf32> -> vector<32x512xf32>
    %cst_30 = arith.constant 0.000000e+00 : f32
    %60 = vector.broadcast %cst_30 : f32 to vector<32x512xf32>
    %61 = arith.cmpf oge, %52, %60 : vector<32x512xf32>
    %cst_31 = arith.constant 1.000000e+00 : f32
    %62 = vector.broadcast %cst_31 : f32 to vector<32x512xf32>
    %63 = arith.subf %62, %59 : vector<32x512xf32>
    %64 = arith.select %61, %59, %63 : vector<32x512xi1>, vector<32x512xf32>
    %65 = arith.mulf %52, %64 : vector<32x512xf32>
    %c17_i32_32 = arith.constant 17 : i32
    %66 = tpu.dynamic_rotate %65 by %c17_i32_32 dim 1 : vector<32x512xf32>, i32 -> vector<32x512xf32>
    %c68_33 = arith.constant 68 : index
    %c0_34 = arith.constant 0 : index
    %67 = vector.load %arg4[%c68_33, %c0_34] : memref<77x512xf32, #tpu.memory_space<vmem>>, vector<1x512xf32>
    %68 = vector.broadcast %67 : vector<1x512xf32> to vector<32x512xf32>
    %69 = arith.mulf %66, %68 : vector<32x512xf32>
    %70 = arith.truncf %69 : vector<32x512xf32> to vector<32x512xbf16>
    %c0_35 = arith.constant 0 : index
    %c0_36 = arith.constant 0 : index
    %71 = vector.load %arg7[%c0_35, %c0_36] : memref<288x512xbf16, #tpu.memory_space<vmem>>, vector<32x512xbf16>
    tpu.vector_store %arg7[%c0_35, %c0_36], %70 {strides = array<i32>} : memref<288x512xbf16, #tpu.memory_space<vmem>>, vector<32x512xbf16>,
    %c16_i32_37 = arith.constant 16 : i32
    %72 = tpu.dynamic_rotate %65 by %c16_i32_37 dim 1 : vector<32x512xf32>, i32 -> vector<32x512xf32>
    %c69_38 = arith.constant 69 : index
    %c0_39 = arith.constant 0 : index
    %73 = vector.load %arg4[%c69_38, %c0_39] : memref<77x512xf32, #tpu.memory_space<vmem>>, vector<1x512xf32>
    %74 = vector.broadcast %73 : vector<1x512xf32> to vector<32x512xf32>
    %75 = arith.mulf %72, %74 : vector<32x512xf32>
    %76 = arith.truncf %75 : vector<32x512xf32> to vector<32x512xbf16>
    %c32_40 = arith.constant 32 : index
    %c0_41 = arith.constant 0 : index
    %77 = vector.load %arg7[%c32_40, %c0_41] : memref<288x512xbf16, #tpu.memory_space<vmem>>, vector<32x512xbf16>
    tpu.vector_store %arg7[%c32_40, %c0_41], %76 {strides = array<i32>} : memref<288x512xbf16, #tpu.memory_space<vmem>>, vector<32x512xbf16>,
    %c15_i32_42 = arith.constant 15 : i32
    %78 = tpu.dynamic_rotate %65 by %c15_i32_42 dim 1 : vector<32x512xf32>, i32 -> vector<32x512xf32>
    %c70_43 = arith.constant 70 : index
    %c0_44 = arith.constant 0 : index
    %79 = vector.load %arg4[%c70_43, %c0_44] : memref<77x512xf32, #tpu.memory_space<vmem>>, vector<1x512xf32>
    %80 = vector.broadcast %79 : vector<1x512xf32> to vector<32x512xf32>
    %81 = arith.mulf %78, %80 : vector<32x512xf32>
    %82 = arith.truncf %81 : vector<32x512xf32> to vector<32x512xbf16>
    %c64 = arith.constant 64 : index
    %c0_45 = arith.constant 0 : index
    %83 = vector.load %arg7[%c64, %c0_45] : memref<288x512xbf16, #tpu.memory_space<vmem>>, vector<32x512xbf16>
    tpu.vector_store %arg7[%c64, %c0_45], %82 {strides = array<i32>} : memref<288x512xbf16, #tpu.memory_space<vmem>>, vector<32x512xbf16>,
    %c1_i32_46 = arith.constant 1 : i32
    %84 = tpu.dynamic_rotate %65 by %c1_i32_46 dim 1 : vector<32x512xf32>, i32 -> vector<32x512xf32>
    %c71_47 = arith.constant 71 : index
    %c0_48 = arith.constant 0 : index
    %85 = vector.load %arg4[%c71_47, %c0_48] : memref<77x512xf32, #tpu.memory_space<vmem>>, vector<1x512xf32>
    %86 = vector.broadcast %85 : vector<1x512xf32> to vector<32x512xf32>
    %87 = arith.mulf %84, %86 : vector<32x512xf32>
    %88 = arith.truncf %87 : vector<32x512xf32> to vector<32x512xbf16>
    %c96 = arith.constant 96 : index
    %c0_49 = arith.constant 0 : index
    %89 = vector.load %arg7[%c96, %c0_49] : memref<288x512xbf16, #tpu.memory_space<vmem>>, vector<32x512xbf16>
    tpu.vector_store %arg7[%c96, %c0_49], %88 {strides = array<i32>} : memref<288x512xbf16, #tpu.memory_space<vmem>>, vector<32x512xbf16>,
    %c72_50 = arith.constant 72 : index
    %c0_51 = arith.constant 0 : index
    %90 = vector.load %arg4[%c72_50, %c0_51] : memref<77x512xf32, #tpu.memory_space<vmem>>, vector<1x512xf32>
    %91 = vector.broadcast %90 : vector<1x512xf32> to vector<32x512xf32>
    %92 = arith.mulf %65, %91 : vector<32x512xf32>
    %93 = arith.truncf %92 : vector<32x512xf32> to vector<32x512xbf16>
    %c128 = arith.constant 128 : index
    %c0_52 = arith.constant 0 : index
    %94 = vector.load %arg7[%c128, %c0_52] : memref<288x512xbf16, #tpu.memory_space<vmem>>, vector<32x512xbf16>
    tpu.vector_store %arg7[%c128, %c0_52], %93 {strides = array<i32>} : memref<288x512xbf16, #tpu.memory_space<vmem>>, vector<32x512xbf16>,
    %c511_i32_53 = arith.constant 511 : i32
    %95 = tpu.dynamic_rotate %65 by %c511_i32_53 dim 1 : vector<32x512xf32>, i32 -> vector<32x512xf32>
    %c73_54 = arith.constant 73 : index
    %c0_55 = arith.constant 0 : index
    %96 = vector.load %arg4[%c73_54, %c0_55] : memref<77x512xf32, #tpu.memory_space<vmem>>, vector<1x512xf32>
    %97 = vector.broadcast %96 : vector<1x512xf32> to vector<32x512xf32>
    %98 = arith.mulf %95, %97 : vector<32x512xf32>
    %99 = arith.truncf %98 : vector<32x512xf32> to vector<32x512xbf16>
    %c160 = arith.constant 160 : index
    %c0_56 = arith.constant 0 : index
    %100 = vector.load %arg7[%c160, %c0_56] : memref<288x512xbf16, #tpu.memory_space<vmem>>, vector<32x512xbf16>
    tpu.vector_store %arg7[%c160, %c0_56], %99 {strides = array<i32>} : memref<288x512xbf16, #tpu.memory_space<vmem>>, vector<32x512xbf16>,
    %c497_i32_57 = arith.constant 497 : i32
    %101 = tpu.dynamic_rotate %65 by %c497_i32_57 dim 1 : vector<32x512xf32>, i32 -> vector<32x512xf32>
    %c74_58 = arith.constant 74 : index
    %c0_59 = arith.constant 0 : index
    %102 = vector.load %arg4[%c74_58, %c0_59] : memref<77x512xf32, #tpu.memory_space<vmem>>, vector<1x512xf32>
    %103 = vector.broadcast %102 : vector<1x512xf32> to vector<32x512xf32>
    %104 = arith.mulf %101, %103 : vector<32x512xf32>
    %105 = arith.truncf %104 : vector<32x512xf32> to vector<32x512xbf16>
    %c192 = arith.constant 192 : index
    %c0_60 = arith.constant 0 : index
    %106 = vector.load %arg7[%c192, %c0_60] : memref<288x512xbf16, #tpu.memory_space<vmem>>, vector<32x512xbf16>
    tpu.vector_store %arg7[%c192, %c0_60], %105 {strides = array<i32>} : memref<288x512xbf16, #tpu.memory_space<vmem>>, vector<32x512xbf16>,
    %c496_i32_61 = arith.constant 496 : i32
    %107 = tpu.dynamic_rotate %65 by %c496_i32_61 dim 1 : vector<32x512xf32>, i32 -> vector<32x512xf32>
    %c75_62 = arith.constant 75 : index
    %c0_63 = arith.constant 0 : index
    %108 = vector.load %arg4[%c75_62, %c0_63] : memref<77x512xf32, #tpu.memory_space<vmem>>, vector<1x512xf32>
    %109 = vector.broadcast %108 : vector<1x512xf32> to vector<32x512xf32>
    %110 = arith.mulf %107, %109 : vector<32x512xf32>
    %111 = arith.truncf %110 : vector<32x512xf32> to vector<32x512xbf16>
    %c224 = arith.constant 224 : index
    %c0_64 = arith.constant 0 : index
    %112 = vector.load %arg7[%c224, %c0_64] : memref<288x512xbf16, #tpu.memory_space<vmem>>, vector<32x512xbf16>
    tpu.vector_store %arg7[%c224, %c0_64], %111 {strides = array<i32>} : memref<288x512xbf16, #tpu.memory_space<vmem>>, vector<32x512xbf16>,
    %c495_i32_65 = arith.constant 495 : i32
    %113 = tpu.dynamic_rotate %65 by %c495_i32_65 dim 1 : vector<32x512xf32>, i32 -> vector<32x512xf32>
    %c76_66 = arith.constant 76 : index
    %c0_67 = arith.constant 0 : index
    %114 = vector.load %arg4[%c76_66, %c0_67] : memref<77x512xf32, #tpu.memory_space<vmem>>, vector<1x512xf32>
    %115 = vector.broadcast %114 : vector<1x512xf32> to vector<32x512xf32>
    %116 = arith.mulf %113, %115 : vector<32x512xf32>
    %117 = arith.truncf %116 : vector<32x512xf32> to vector<32x512xbf16>
    %c256 = arith.constant 256 : index
    %c0_68 = arith.constant 0 : index
    %118 = vector.load %arg7[%c256, %c0_68] : memref<288x512xbf16, #tpu.memory_space<vmem>>, vector<32x512xbf16>
    tpu.vector_store %arg7[%c256, %c0_68], %117 {strides = array<i32>} : memref<288x512xbf16, #tpu.memory_space<vmem>>, vector<32x512xbf16>,
    %c0_69 = arith.constant 0 : index
    %c0_70 = arith.constant 0 : index
    %119 = vector.load %arg3[%c0_69, %c0_70] : memref<4x288xbf16, #tpu.memory_space<vmem>>, vector<4x288xbf16>
    %c0_71 = arith.constant 0 : index
    %c0_72 = arith.constant 0 : index
    %120 = vector.load %arg7[%c0_71, %c0_72] : memref<288x512xbf16, #tpu.memory_space<vmem>>, vector<288x512xbf16>
    %cst_73 = arith.constant dense<0.000000e+00> : vector<4x512xf32>
    %121 = tpu.matmul %119, %120, %cst_73 {dimension_numbers = #tpu.dot_dimension_numbers<[1], [0], [0], [1], [0, 0, 1, 1], [], []>} : vector<4x288xbf16>, vector<288x512xbf16>, vector<4x512xf32> -> vector<4x512xf32>
    %c64_74 = arith.constant 64 : index
    %c0_75 = arith.constant 0 : index
    %122 = vector.load %arg4[%c64_74, %c0_75] : memref<77x512xf32, #tpu.memory_space<vmem>>, vector<4x512xf32>
    %123 = arith.addf %121, %122 : vector<4x512xf32>
    %124 = arith.addf %123, %0 : vector<4x512xf32>
    %c0_76 = arith.constant 0 : index
    %c0_77 = arith.constant 0 : index
    %125 = vector.load %arg5[%c0_76, %c0_77] : memref<4x512xf32, #tpu.memory_space<vmem>>, vector<4x512xf32>
    tpu.vector_store %arg5[%c0_76, %c0_77], %124 {strides = array<i32>} : memref<4x512xf32, #tpu.memory_space<vmem>>, vector<4x512xf32>,
    return
  }
  func.func @transform_0(%arg0: i32) -> (i32, i32) {
    %c0_i32 = arith.constant 0 : i32
    %c0_i32_0 = arith.constant 0 : i32
    return %c0_i32, %arg0 : i32, i32
  }
  func.func @transform_1(%arg0: i32) -> (i32, i32) {
    %c0_i32 = arith.constant 0 : i32
    %c0_i32_0 = arith.constant 0 : i32
    %c0_i32_1 = arith.constant 0 : i32
    return %c0_i32, %c0_i32_0 : i32, i32
  }
  func.func @transform_2(%arg0: i32) -> (i32, i32) {
    %c0_i32 = arith.constant 0 : i32
    %c0_i32_0 = arith.constant 0 : i32
    %c0_i32_1 = arith.constant 0 : i32
    return %c0_i32, %c0_i32_0 : i32, i32
  }
  func.func @transform_3(%arg0: i32) -> (i32, i32) {
    %c0_i32 = arith.constant 0 : i32
    %c0_i32_0 = arith.constant 0 : i32
    return %c0_i32, %arg0 : i32, i32
  }
  func.func @transform_4(%arg0: i32) -> (i32, i32) {
    %c0_i32 = arith.constant 0 : i32
    %c0_i32_0 = arith.constant 0 : i32
    return %c0_i32, %arg0 : i32, i32
  }
}

</mosaic_0001>

<bundles_post_ra>
// kernel: _apply_model.1
= control target key start
LH: loop header
LB: loop body
LE: loop exit
PB: predicated region body
PF: predicated region fallthrough
CT: control target
= control target key end

     0   :  { %s2121_s17 = smov 1   ;;  %s2122_s18 = smov 16   ;;  %v34_v4 = vlaneseq  ;;  %v3949_v21 = vmov 0   ;;  %vm516_vm8 = vcmask 1041408   ;;  %vm509_vm9 = vcmask 293888   ;;  %s3944_s0 = inlined_call_operand.vmem [shape: f32[4,512], index: 0, kind: input, shape index: {}]   ;;  %s3945_s3 = inlined_call_operand.vmem [shape: f32[77,512], index: 3, kind: input, shape index: {}]   ;;  %s3946_s1 = inlined_call_operand.vmem [shape: bf16[32,36], index: 1, kind: input, shape index: {}]   ;;  %s3947_s2 = inlined_call_operand.vmem [shape: bf16[4,288], index: 2, kind: input, shape index: {}]   ;;  %s3948_s4 = inlined_call_operand.vmem [shape: f32[4,512], index: 4, kind: output, shape index: {}]  }
   0x1   :  { %v18_v0 = vld [vmem:[%s3944_s0] sm:$0xff]  ;;  %v19_v2 = vld [vmem:[%s3944_s0 + $0x8] sm:$0xff]  ;;  %s2123_s23 = smov 17   ;;  %s2124_s24 = smov 15   ;;  %561 = vmatprep.mubr.bf16.mxu0 %v3949_v21  ;;  %614 = vmatprep.mubr.bf16.mxu1 %v3949_v21 }
   0x2   :  { %172 = vrot.lane.b32.xlu1 %v18_v0, %s2121_s17  ;;  %72 = vrot.lane.b32.xlu0 %v18_v0, %s2122_s18  ;;  %v2161_v1 = vcombine.high %v18_v0, %v18_v0  ;;  %v2170_v3 = vcombine.high %v19_v2, %v19_v2  ;;  %v2175_v5 = vshrl.u32 %v34_v4, 7  ;;  %v2015_v8 = vld [vmem:[%s3945_s3 + $0x120] ss:$8 sm:$0xf]  ;;  %s2125_s25 = smov 127   ;;  %s2126_s26 = smov 112  }
   0x3   :  { %s2127_s27 = smov 113   ;;  %s2128_s28 = smov 111   ;;  %v2237_v22 = vand.u32 127, %v34_v4  ;;  %v2014_v23 = vld [vmem:[%s3945_s3 + $0x107] ss:$8 sm:$0xf] }
   0x4   :  { %4075 = vst [vmem:[#allocation4_spill] sm:$0xff] %v2161_v1  ;;  %4076 = vst [vmem:[#allocation5_spill] sm:$0xff] %v2170_v3  ;;  %v2181_v6 = vsub.s32 1, %v2175_v5  ;;  %v2184_v7 = vsub.s32 0, %v2175_v5  ;;  %v2198_v13 = vsub.s32 2, %v2175_v5  ;;  %v2201_v14 = vsub.s32 3, %v2175_v5 }
   0x5   :  { %4077 = vst [vmem:[#allocation6_spill] sm:$0xff] %v2175_v5  ;;  %v2012_v24 = vld [vmem:[%s3945_s3 + $0x105] ss:$8 sm:$0xf]  ;;  %vm180_vm0 = vcmp.lt.s32.totalorder %v2237_v22, 1  ;;  %vm80_vm1 = vcmp.lt.s32.totalorder %v2237_v22, 16 }
   0x6   :  { %174 = vrot.lane.b32.xlu1 %v2161_v1, %s2121_s17  ;;  %74 = vrot.lane.b32.xlu0 %v2161_v1, %s2122_s18  ;;  %v234_v9 = vrot.slane %v2015_v8, %v2184_v7  ;;  %v238_v10 = vrot.slane %v2015_v8, %v2181_v6  ;;  %4078 = vst [vmem:[#allocation7_spill] sm:$0xff] %v2198_v13  ;;  %v2011_v51 = vld [vmem:[%s3945_s3 + $0x104] ss:$8 sm:$0xf]  ;;  %vm36_vm2 = vcmp.lt.s32.totalorder %v2237_v22, 17  ;;  %vm136_vm3 = vcmp.lt.s32.totalorder %v2237_v22, 15 }
   0x7   :  { %v242_v16 = vrot.slane %v2015_v8, %v2198_v13  ;;  %v246_v17 = vrot.slane %v2015_v8, %v2201_v14  ;;  %v195_v27 = vrot.slane %v2014_v23, %v2181_v6  ;;  %v95_v28 = vrot.slane %v2012_v24, %v2181_v6 }
   0x8   :  { %v247_v11 = vcombine.low %v234_v9, %v238_v10  ;;  %v91_v33 = vrot.slane %v2012_v24, %v2184_v7  ;;  %v99_v36 = vrot.slane %v2012_v24, %v2198_v13  ;;  %v103_v37 = vrot.slane %v2012_v24, %v2201_v14 }
   0x9   :  { %v248_v18 = vcombine.low %v242_v16, %v246_v17  ;;  %v191_v42 = vrot.slane %v2014_v23, %v2184_v7  ;;  %v199_v46 = vrot.slane %v2014_v23, %v2198_v13  ;;  %v203_v50 = vrot.slane %v2014_v23, %v2201_v14 }
   0xa   :  { %78 = vrot.lane.b32.xlu1 %v2170_v3, %s2122_s18  ;;  %76 = vrot.lane.b32.xlu0 %v19_v2, %s2122_s18  ;;  %v251_v12 = vmul.f32 %v247_v11, %v18_v0  ;;  %v51_v63 = vrot.slane %v2011_v51, %v2181_v6  ;;  %v55_v23 = vrot.slane %v2011_v51, %v2198_v13  ;;  %vm271_vm4 = vcmp.lt.s32.totalorder %v2237_v22, 127 }
   0xb   :  { %v252_v19 = vmul.f32 %v248_v18, %v19_v2  ;;  %v59_v24 = vrot.slane %v2011_v51, %v2201_v14  ;;  %vm371_vm5 = vcmp.lt.s32.totalorder %v2237_v22, 112  ;;  %vm327_vm6 = vcmp.lt.s32.totalorder %v2237_v22, 113 }
   0xc   :  { %v255_v15 = vcombine.high %v251_v12, %v251_v12  ;;  %259 = vst [vmem:[#allocation2 + $0x40] sm:$0xf] %v251_v12  ;;  %vm427_vm7 = vcmp.lt.s32.totalorder %v2237_v22, 111 }
   0xd   :  { %v256_v20 = vcombine.high %v252_v19, %v252_v19  ;;  %261 = vst [vmem:[#allocation2 + $0x50] sm:$0xf] %v252_v19 }
   0xe   :  { %178 = vrot.lane.b32.xlu1 %v2170_v3, %s2121_s17  ;;  %176 = vrot.lane.b32.xlu0 %v19_v2, %s2121_s17  ;;  %260 = vst [vmem:[#allocation2 + $0x48] sm:$0xf] %v255_v15 }
   0xf   :  { %262 = vst [vmem:[#allocation2 + $0x58] sm:$0xf] %v256_v20  ;;  %v47_v20 = vrot.slane %v2011_v51, %v2184_v7 }
  0x12   :  { %28 = vrot.lane.b32.xlu1 %v2161_v1, %s2123_s23  ;;  %26 = vrot.lane.b32.xlu0 %v18_v0, %s2123_s23 }
  0x16   :  { %130 = vrot.lane.b32.xlu1 %v2161_v1, %s2124_s24  ;;  %128 = vrot.lane.b32.xlu0 %v18_v0, %s2124_s24 }
  0x1a   :  { %32 = vrot.lane.b32.xlu1 %v2170_v3, %s2123_s23  ;;  %30 = vrot.lane.b32.xlu0 %v19_v2, %s2123_s23 }
  0x1e   :  { %134 = vrot.lane.b32.xlu1 %v2170_v3, %s2124_s24  ;;  %132 = vrot.lane.b32.xlu0 %v19_v2, %s2124_s24 }
  0x22   :  { %267 = vrot.lane.b32.xlu1 %v19_v2, %s2125_s25  ;;  %265 = vrot.lane.b32.xlu0 %v2161_v1, %s2125_s25 }
  0x26   :  { %367 = vrot.lane.b32.xlu1 %v19_v2, %s2126_s26  ;;  %365 = vrot.lane.b32.xlu0 %v2161_v1, %s2126_s26 }
  0x2a   :  { %269 = vrot.lane.b32.xlu1 %v2170_v3, %s2125_s25  ;;  %263 = vrot.lane.b32.xlu0 %v18_v0, %s2125_s25 }
  0x2e   :  { %369 = vrot.lane.b32.xlu1 %v2170_v3, %s2126_s26  ;;  %363 = vrot.lane.b32.xlu0 %v18_v0, %s2126_s26 }
  0x32   :  { %323 = vrot.lane.b32.xlu1 %v19_v2, %s2127_s27  ;;  %321 = vrot.lane.b32.xlu0 %v2161_v1, %s2127_s27 }
  0x36   :  { %325 = vrot.lane.b32.xlu1 %v2170_v3, %s2127_s27  ;;  %319 = vrot.lane.b32.xlu0 %v18_v0, %s2127_s27 }
  0x3a   :  { %421 = vrot.lane.b32.xlu1 %v2161_v1, %s2128_s28  ;;  %419 = vrot.lane.b32.xlu0 %v18_v0, %s2128_s28  ;;  %v2013_v0 = vld [vmem:[%s3945_s3 + $0x106] ss:$8 sm:$0xf] }
  0x3b   :  { %v151_v15 = vrot.slane %v2013_v0, %v2181_v6 }
  0x3e   :  { %425 = vrot.lane.b32.xlu1 %v2170_v3, %s2128_s28  ;;  %423 = vrot.lane.b32.xlu0 %v19_v2, %s2128_s28 }
  0x74   :  { %v173_v25 = vpop.permute.xlu1 %172  ;;  %v73_v26 = vpop.permute.xlu0 %72 }
  0x78   :  { %v175_v29 = vpop.permute.xlu1 %174  ;;  %v75_v30 = vpop.permute.xlu0 %74 }
  0x79   :  { %v183_v31 = vsel %vm180_vm0, %v173_v25, %v175_v29  ;;  %v83_v32 = vsel %vm80_vm1, %v73_v26, %v75_v30 }
  0x7a   :  { %v209_v34 = vmul.f32 %v195_v27, %v183_v31  ;;  %v109_v35 = vmul.f32 %v95_v28, %v83_v32  ;;  %v147_v27 = vrot.slane %v2013_v0, %v2184_v7  ;;  %v155_v31 = vrot.slane %v2013_v0, %v2198_v13 }
  0x7c   :  { %v217_v38 = vrot.slane %v209_v34, 4  ;;  %v117_v39 = vrot.slane %v109_v35, 4  ;;  %v79_v40 = vpop.permute.xlu1 %78  ;;  %v77_v41 = vpop.permute.xlu0 %76  ;;  %v159_v35 = vrot.slane %v2013_v0, %v2201_v14 }
  0x7d   :  { %v84_v43 = vsel %vm80_vm1, %v79_v40, %v73_v26  ;;  %v81_v44 = vsel %vm80_vm1, %v77_v41, %v79_v40  ;;  %v82_v45 = vsel %vm80_vm1, %v75_v30, %v77_v41 }
  0x7e   :  { %225 = vst [vmem:[#allocation2 + $0x28] sm:$0xf0] %v217_v38  ;;  %125 = vst [vmem:[#allocation2 + $0x8] sm:$0xf0] %v117_v39  ;;  %v108_v47 = vmul.f32 %v91_v33, %v84_v43  ;;  %v110_v48 = vmul.f32 %v99_v36, %v82_v45  ;;  %v111_v49 = vmul.f32 %v103_v37, %v81_v44 }
  0x7f   :  { %v2016_v36 = vld [vmem:[%s3945_s3 + $0x121] ss:$8 sm:$0xf] }
  0x80   :  { %v116_v52 = vrot.slane %v108_v47, 4  ;;  %v118_v53 = vrot.slane %v110_v48, 4  ;;  %v119_v54 = vrot.slane %v111_v49, 4  ;;  %v179_v55 = vpop.permute.xlu1 %178  ;;  %v177_v56 = vpop.permute.xlu0 %176  ;;  %v286_v45 = vrot.slane %v2016_v36, %v2181_v6  ;;  %v2018_v48 = vld [vmem:[%s3945_s3 + $0x123] ss:$8 sm:$0xf] }
  0x81   :  { %v184_v57 = vsel %vm180_vm0, %v179_v55, %v173_v25  ;;  %v181_v58 = vsel %vm180_vm0, %v177_v56, %v179_v55  ;;  %v182_v59 = vsel %vm180_vm0, %v175_v29, %v177_v56 }
  0x82   :  { %124 = vst [vmem:[#allocation2] sm:$0xf0] %v116_v52  ;;  %126 = vst [vmem:[#allocation2 + $0x10] sm:$0xf0] %v118_v53  ;;  %v208_v60 = vmul.f32 %v191_v42, %v184_v57  ;;  %v210_v61 = vmul.f32 %v199_v46, %v182_v59  ;;  %v211_v62 = vmul.f32 %v203_v50, %v181_v58 }
  0x83   :  { %127 = vst [vmem:[#allocation2 + $0x18] sm:$0xf0] %v119_v54  ;;  %v386_v54 = vrot.slane %v2018_v48, %v2181_v6 }
  0x84   :  { %v216_v2 = vrot.slane %v208_v60, 4  ;;  %v218_v4 = vrot.slane %v210_v61, 4  ;;  %v219_v8 = vrot.slane %v211_v62, 4  ;;  %v29_v9 = vpop.permute.xlu1 %28  ;;  %v27_v10 = vpop.permute.xlu0 %26  ;;  %v290_v60 = vrot.slane %v2016_v36, %v2198_v13 }
  0x85   :  { %v39_v11 = vsel %vm36_vm2, %v27_v10, %v29_v9  ;;  %v282_v61 = vrot.slane %v2016_v36, %v2184_v7  ;;  %v294_v62 = vrot.slane %v2016_v36, %v2201_v14 }
  0x86   :  { %224 = vst [vmem:[#allocation2 + $0x20] sm:$0xf0] %v216_v2  ;;  %226 = vst [vmem:[#allocation2 + $0x30] sm:$0xf0] %v218_v4  ;;  %v65_v12 = vmul.f32 %v51_v63, %v39_v11  ;;  %v382_v11 = vrot.slane %v2018_v48, %v2184_v7 }
  0x87   :  { %227 = vst [vmem:[#allocation2 + $0x38] sm:$0xf0] %v219_v8 }
  0x88   :  { %69 = vst [vmem:[#allocation2 + $0x8] sm:$0xf] %v65_v12  ;;  %v131_v16 = vpop.permute.xlu1 %130  ;;  %v129_v17 = vpop.permute.xlu0 %128 }
  0x89   :  { %v139_v18 = vsel %vm136_vm3, %v129_v17, %v131_v16 }
  0x8a   :  { %v165_v19 = vmul.f32 %v151_v15, %v139_v18 }
  0x8c   :  { %169 = vst [vmem:[#allocation2 + $0x28] sm:$0xf] %v165_v19  ;;  %v33_v25 = vpop.permute.xlu1 %32  ;;  %v31_v26 = vpop.permute.xlu0 %30 }
  0x8d   :  { %v40_v28 = vsel %vm36_vm2, %v33_v25, %v27_v10  ;;  %v37_v29 = vsel %vm36_vm2, %v31_v26, %v33_v25  ;;  %v38_v30 = vsel %vm36_vm2, %v29_v9, %v31_v26  ;;  %v390_v10 = vrot.slane %v2018_v48, %v2198_v13 }
  0x8e   :  { %v64_v32 = vmul.f32 %v47_v20, %v40_v28  ;;  %v66_v33 = vmul.f32 %v55_v23, %v38_v30  ;;  %v67_v34 = vmul.f32 %v59_v24, %v37_v29  ;;  %v394_v25 = vrot.slane %v2018_v48, %v2201_v14  ;;  %v2017_v29 = vld [vmem:[%s3945_s3 + $0x122] ss:$8 sm:$0xf] }
  0x8f   :  { %v468_v46 = vld [vmem:[#allocation2 + $0x8] sm:$0xff] }
  0x90   :  { %68 = vst [vmem:[#allocation2] sm:$0xf] %v64_v32  ;;  %70 = vst [vmem:[#allocation2 + $0x10] sm:$0xf] %v66_v33  ;;  %v135_v37 = vpop.permute.xlu1 %134  ;;  %v133_v38 = vpop.permute.xlu0 %132 }
  0x91   :  { %71 = vst [vmem:[#allocation2 + $0x18] sm:$0xf] %v67_v34  ;;  %v140_v39 = vsel %vm136_vm3, %v135_v37, %v129_v17  ;;  %v137_v40 = vsel %vm136_vm3, %v133_v38, %v135_v37  ;;  %v138_v41 = vsel %vm136_vm3, %v131_v16, %v133_v38 }
  0x92   :  { %v164_v42 = vmul.f32 %v147_v27, %v140_v39  ;;  %v166_v43 = vmul.f32 %v155_v31, %v138_v41  ;;  %v167_v44 = vmul.f32 %v159_v35, %v137_v40  ;;  %v342_v41 = vrot.slane %v2017_v29, %v2181_v6 }
  0x93   :  { %v472_v47 = vld [vmem:[#allocation2 + $0x28] sm:$0xff] }
  0x94   :  { %168 = vst [vmem:[#allocation2 + $0x20] sm:$0xf] %v164_v42  ;;  %170 = vst [vmem:[#allocation2 + $0x30] sm:$0xf] %v166_v43  ;;  %v268_v49 = vpop.permute.xlu1 %267  ;;  %v266_v50 = vpop.permute.xlu0 %265  ;;  %v488_v51 = vpack.c.bf16 %v472_v47, %v468_v46 }
  0x95   :  { %171 = vst [vmem:[#allocation2 + $0x38] sm:$0xf] %v167_v44  ;;  %v273_v52 = vsel %vm271_vm4, %v266_v50, %v268_v49 }
  0x96   :  { %v300_v53 = vmul.f32 %v286_v45, %v273_v52  ;;  %529 = vmatprep.subr.bf16.mxu0 %v488_v51  ;;  %v350_v51 = vrot.slane %v2017_v29, %v2201_v14  ;;  %v2019_v52 = vld [vmem:[%s3945_s3 + $0x124] ss:$8 sm:$0xf] }
  0x97   :  { %v467_v63 = vld [vmem:[#allocation2] sm:$0xff]  ;;  %v469_v2 = vld [vmem:[#allocation2 + $0x10] sm:$0xff] }
  0x98   :  { %v308_v55 = vrot.slane %v300_v53, 4  ;;  %v368_v56 = vpop.permute.xlu1 %367  ;;  %v366_v57 = vpop.permute.xlu0 %365  ;;  %v470_v0 = vld [vmem:[#allocation2 + $0x18] sm:$0xff] }
  0x99   :  { %v373_v58 = vsel %vm371_vm5, %v366_v57, %v368_v56 }
  0x9a   :  { %316 = vst [vmem:[#allocation2 + $0x48] sm:$0xf0] %v308_v55  ;;  %v400_v59 = vmul.f32 %v386_v54, %v373_v58 }
  0x9b   :  { %v471_v4 = vld [vmem:[#allocation2 + $0x20] sm:$0xff]  ;;  %v473_v9 = vld [vmem:[#allocation2 + $0x30] sm:$0xff] }
  0x9c   :  { %v474_v8 = vld [vmem:[#allocation2 + $0x38] sm:$0xff]  ;;  %v408_v12 = vrot.slane %v400_v59, 4  ;;  %v270_v15 = vpop.permute.xlu1 %269  ;;  %v264_v16 = vpop.permute.xlu0 %263  ;;  %v487_v17 = vpack.c.bf16 %v471_v4, %v467_v63  ;;  %v489_v19 = vpack.c.bf16 %v473_v9, %v469_v2  ;;  %v450_v4 = vrot.slane %v2019_v52, %v2201_v14 }
  0x9d   :  { %v490_v18 = vpack.c.bf16 %v474_v8, %v470_v0  ;;  %v272_v20 = vsel %vm271_vm4, %v268_v49, %v270_v15  ;;  %v274_v23 = vsel %vm271_vm4, %v264_v16, %v266_v50  ;;  %v275_v24 = vsel %vm271_vm4, %v270_v15, %v264_v16 }
  0x9e   :  { %416 = vst [vmem:[#allocation2 + $0x68] sm:$0xf0] %v408_v12  ;;  %v301_v26 = vmul.f32 %v290_v60, %v272_v20  ;;  %v299_v27 = vmul.f32 %v282_v61, %v274_v23  ;;  %v302_v28 = vmul.f32 %v294_v62, %v275_v24  ;;  %530 = vmatpush1.bf16.msra.mxu0 %v487_v17 }
  0x9f   :  { %582 = vmatprep.subr.bf16.mxu1 %v490_v18  ;;  %v346_v49 = vrot.slane %v2017_v29, %v2198_v13  ;;  %v338_v50 = vrot.slane %v2017_v29, %v2184_v7  ;;  %v438_v61 = vrot.slane %v2019_v52, %v2184_v7  ;;  %v442_v8 = vrot.slane %v2019_v52, %v2181_v6 }
  0xa0   :  { %583 = vmatpush1.bf16.msra.mxu1 %v489_v19  ;;  %v309_v30 = vrot.slane %v301_v26, 4  ;;  %v307_v31 = vrot.slane %v299_v27, 4  ;;  %v310_v32 = vrot.slane %v302_v28, 4  ;;  %v370_v33 = vpop.permute.xlu1 %369  ;;  %v364_v34 = vpop.permute.xlu0 %363  ;;  %v446_v9 = vrot.slane %v2019_v52, %v2198_v13  ;;  %v639_v52 = vld [vmem:[%s3945_s3 + $0x20] sm:$0xff] }
  0xa1   :  { %v372_v35 = vsel %vm371_vm5, %v368_v56, %v370_v33  ;;  %v374_v36 = vsel %vm371_vm5, %v364_v34, %v366_v57  ;;  %v375_v37 = vsel %vm371_vm5, %v370_v33, %v364_v34 }
  0xa2   :  { %317 = vst [vmem:[#allocation2 + $0x50] sm:$0xf0] %v309_v30  ;;  %315 = vst [vmem:[#allocation2 + $0x40] sm:$0xf0] %v307_v31  ;;  %v401_v38 = vmul.f32 %v390_v10, %v372_v35  ;;  %v399_v39 = vmul.f32 %v382_v11, %v374_v36  ;;  %v402_v40 = vmul.f32 %v394_v25, %v375_v37  ;;  %v476_v10 = vld [vmem:[#allocation2 + $0x48] sm:$0xff] }
  0xa3   :  { %318 = vst [vmem:[#allocation2 + $0x58] sm:$0xf0] %v310_v32 }
  0xa4   :  { %v409_v42 = vrot.slane %v401_v38, 4  ;;  %v407_v43 = vrot.slane %v399_v39, 4  ;;  %v410_v44 = vrot.slane %v402_v40, 4  ;;  %v324_v45 = vpop.permute.xlu1 %323  ;;  %v322_v46 = vpop.permute.xlu0 %321 }
  0xa5   :  { %v329_v47 = vsel %vm327_vm6, %v322_v46, %v324_v45 }
  0xa6   :  { %417 = vst [vmem:[#allocation2 + $0x70] sm:$0xf0] %v409_v42  ;;  %415 = vst [vmem:[#allocation2 + $0x60] sm:$0xf0] %v407_v43  ;;  %v356_v48 = vmul.f32 %v342_v41, %v329_v47  ;;  %v637_v47 = vld [vmem:[%s3945_s3 + $0x10] sm:$0xff] }
  0xa7   :  { %418 = vst [vmem:[#allocation2 + $0x78] sm:$0xf0] %v410_v44  ;;  %v2051_v44 = vld [vmem:[%s3946_s1] sm:$0xff]  }
  0xa8   :  { %360 = vst [vmem:[#allocation2 + $0x68] sm:$0xf] %v356_v48  ;;  %v326_v53 = vpop.permute.xlu1 %325  ;;  %v320_v54 = vpop.permute.xlu0 %319  ;;  %v667_v48 = vld [vmem:[%s3945_s3 + $0x80] sm:$0xff] }
  0xa9   :  { %v328_v55 = vsel %vm327_vm6, %v324_v45, %v326_v53  ;;  %v330_v56 = vsel %vm327_vm6, %v320_v54, %v322_v46  ;;  %v331_v57 = vsel %vm327_vm6, %v326_v53, %v320_v54  ;;  %v475_v25 = vld [vmem:[#allocation2 + $0x40] sm:$0xff]  ;;  %v477_v27 = vld [vmem:[#allocation2 + $0x50] sm:$0xff]  ;;  %v2052_v45 = vld [vmem:[%s3946_s1 + $0x8] sm:$0xff]  }
  0xaa   :  { %v357_v58 = vmul.f32 %v346_v49, %v328_v55  ;;  %v355_v59 = vmul.f32 %v338_v50, %v330_v56  ;;  %v358_v60 = vmul.f32 %v350_v51, %v331_v57  ;;  %v478_v26 = vld [vmem:[#allocation2 + $0x58] sm:$0xff]  ;;  %v635_v46 = vld [vmem:[%s3945_s3] sm:$0xff]  ;;  %v669_v51 = vld [vmem:[%s3945_s3 + $0x90] sm:$0xff] }
  0xab   :  { %v641_v53 = vld [vmem:[%s3945_s3 + $0x30] sm:$0xff] }
  0xac   :  { %361 = vst [vmem:[#allocation2 + $0x70] sm:$0xf] %v357_v58  ;;  %359 = vst [vmem:[#allocation2 + $0x60] sm:$0xf] %v355_v59  ;;  %v422_v62 = vpop.permute.xlu1 %421  ;;  %v420_v63 = vpop.permute.xlu0 %419 }
  0xad   :  { %362 = vst [vmem:[#allocation2 + $0x78] sm:$0xf] %v358_v60  ;;  %v430_v0 = vsel %vm427_vm7, %v420_v63, %v422_v62 }
  0xae   :  { %v455_v2 = vmul.f32 %v438_v61, %v430_v0 }
  0xaf   :  { %v480_v11 = vld [vmem:[#allocation2 + $0x68] sm:$0xff] }
  0xb0   :  { %459 = vst [vmem:[#allocation2 + $0x80] sm:$0xf] %v455_v2  ;;  %v426_v12 = vpop.permute.xlu1 %425  ;;  %v424_v15 = vpop.permute.xlu0 %423  ;;  %v492_v16 = vpack.c.bf16 %v480_v11, %v476_v10 }
  0xb1   :  { %v431_v17 = vsel %vm427_vm7, %v426_v12, %v420_v63  ;;  %v428_v18 = vsel %vm427_vm7, %v424_v15, %v426_v12  ;;  %v429_v19 = vsel %vm427_vm7, %v422_v62, %v424_v15 }
  0xb2   :  { %v458_v20 = vmul.f32 %v450_v4, %v431_v17  ;;  %v456_v23 = vmul.f32 %v442_v8, %v429_v19  ;;  %v457_v24 = vmul.f32 %v446_v9, %v428_v18  ;;  %531 = vmatprep.subr.bf16.mxu0 %v492_v16  ;;  %v671_v4 = vld [vmem:[%s3945_s3 + $0xa0] sm:$0xff]  ;;  %v673_v8 = vld [vmem:[%s3945_s3 + $0xb0] sm:$0xff] }
  0xb3   :  { %v479_v28 = vld [vmem:[#allocation2 + $0x60] sm:$0xff]  ;;  %v481_v30 = vld [vmem:[#allocation2 + $0x70] sm:$0xff] }
  0xb4   :  { %v482_v29 = vld [vmem:[#allocation2 + $0x78] sm:$0xff]  ;;  %462 = vst [vmem:[#allocation2 + $0x98] sm:$0xf] %v458_v20  ;;  %460 = vst [vmem:[#allocation2 + $0x88] sm:$0xf] %v456_v23  ;;  %v491_v31 = vpack.c.bf16 %v479_v28, %v475_v25  ;;  %v493_v33 = vpack.c.bf16 %v481_v30, %v477_v27 }
  0xb5   :  { %461 = vst [vmem:[#allocation2 + $0x90] sm:$0xf] %v457_v24  ;;  %v494_v32 = vpack.c.bf16 %v482_v29, %v478_v26 }
  0xb6   :  { %532 = vmatpush1.bf16.msra.mxu0 %v491_v31 }
  0xb7   :  { %584 = vmatprep.subr.bf16.mxu1 %v494_v32  ;;  %v483_v34 = vld [vmem:[#allocation2 + $0x80] sm:$0xf] }
  0xb8   :  { %585 = vmatpush1.bf16.msra.mxu1 %v493_v33  ;;  %v495_v35 = vpack.c.bf16 %v483_v34, %v483_v34 }
  0xba   :  { %v518_v42 = vsel %vm516_vm8, %v495_v35, 0 }
  0xbb   :  { %v484_v36 = vld [vmem:[#allocation2 + $0x88] sm:$0xf]  ;;  %v486_v37 = vld [vmem:[#allocation2 + $0x98] sm:$0xf] }
  0xbc   :  { %v485_v38 = vld [vmem:[#allocation2 + $0x90] sm:$0xf]  ;;  %v496_v39 = vpack.c.bf16 %v484_v36, %v484_v36  ;;  %v498_v40 = vpack.c.bf16 %v486_v37, %v486_v37 }
  0xbd   :  { %v497_v41 = vpack.c.bf16 %v485_v38, %v485_v38 }
  0xbe   :  { %2022 = vmatprep.subr.msk.bf16.mxu0 %vm516_vm8, %v496_v39  ;;  %2025 = vmatprep.subr.msk.bf16.mxu1 %vm516_vm8, %v498_v40 }
  0xbf   :  { %v524_v43 = vsel %vm516_vm8, %v497_v41, 0  ;;  %534 = vmatpush1.bf16.msra.mxu0 %v518_v42 }
  0xc0   :  { %587 = vmatpush1.bf16.msra.mxu1 %v524_v43 }
  0xc2   :  { %2023 = vmatmul.mubr.msk.bf16.vlgmr.msra.gmra.mrb[0].mxu0 %vm509_vm9, %v2051_v44 }
  0xc3   :  { %2026 = vmatmul.mubr.msk.bf16.vlgmr.msra.gmra.mrb[0].mxu1 %vm509_vm9, %v2051_v44  ;;  %571 = vmatprep.mubr.bf16.mxu0 %v3949_v21 }
  0xc4   :  { %624 = vmatprep.mubr.bf16.mxu1 %v3949_v21 }
  0xca   :  { %2024 = vmatmul.mubr.msk.bf16.gmra.mrb[4].mxu0 %vm509_vm9, %v2052_v45 }
  0xcb   :  { %2027 = vmatmul.mubr.msk.bf16.gmra.mrb[4].mxu1 %vm509_vm9, %v2052_v45 }
  0xcc   :  { %1902 = vmatprep.mubr.bf16.mxu1 %v3949_v21 }
 0x195   :  { %v563_v49 = vpop.f32.mrb[0].mxu0 }
 0x196   :  { %v616_v50 = vpop.f32.mrb[0].mxu1  ;;  %v651_v54 = vmul.f32 %v635_v46, %v563_v49  ;;  %v2394_v56 = vpop.f32.mrb[1].mxu0 }
 0x197   :  { %v653_v55 = vmul.f32 %v637_v47, %v616_v50  ;;  %v2396_v57 = vpop.f32.mrb[1].mxu1  ;;  %v567_v58 = vpop.f32.mrb[2].mxu0 }
 0x198   :  { %v620_v59 = vpop.f32.mrb[2].mxu1  ;;  %v683_v60 = vadd.f32 %v667_v48, %v651_v54  ;;  %v655_v62 = vmul.f32 %v639_v52, %v567_v58  ;;  %v2398_v0 = vpop.f32.mrb[3].mxu0  ;;  %v2032_v48 = vld [vmem:[%s3945_s3 + $0x120] ss:$8 sm:$0xf] }
 0x199   :  { %v685_v61 = vadd.f32 %v669_v51, %v653_v55  ;;  %v657_v63 = vmul.f32 %v641_v53, %v620_v59  ;;  %v2400_v2 = vpop.f32.mrb[3].mxu1  ;;  %v2432_v55 = vrot.slane %v2032_v48, %v2184_v7 }
 0x19a   :  { %v699_v9 = vand.u32 2147483647, %v683_v60  ;;  %v687_v15 = vadd.f32 %v671_v4, %v655_v62  ;;  %vm795_vm10 = vcmp.ge.f32.partialorder %v683_v60, 0.0 }
 0x19b   :  { %v701_v10 = vand.u32 2147483647, %v685_v61  ;;  %v689_v16 = vadd.f32 %v673_v8, %v657_v63  ;;  %vm797_vm11 = vcmp.ge.f32.partialorder %v685_v61, 0.0  ;;  %4079 = vst [vmem:[#allocation8_spill] sm:$0xff] %v2432_v55 }
 0x19c   :  { %v715_v11 = vsub.f32 0.0, %v699_v9  ;;  %v703_v23 = vand.u32 2147483647, %v687_v15  ;;  %vm799_vm12 = vcmp.ge.f32.partialorder %v687_v15, 0.0  ;;  %v2452_v9 = vrot.slane %v2032_v48, %v2198_v13 }
 0x19d   :  { %v717_v12 = vsub.f32 0.0, %v701_v10  ;;  %v2410_v18 = vpop.f32.mrb[4].mxu0  ;;  %v705_v25 = vand.u32 2147483647, %v689_v16  ;;  %vm801_vm13 = vcmp.ge.f32.partialorder %v689_v16, 0.0 }
 0x19e   :  { %v2408_v17 = vpop.f32.mrb[4].mxu1  ;;  %v731_v19 = vmul.f32 1.442695, %v715_v11  ;;  %v719_v24 = vsub.f32 0.0, %v703_v23  ;;  %v2416_v28 = vpop.f32.mrb[5].mxu0  ;;  %4082 = vst [vmem:[#allocation11_spill] sm:$0xff] %v2452_v9 }
 0x19f   :  { %v735_v20 = vmul.f32 1.442695, %v717_v12  ;;  %v2412_v26 = vpop.f32.mrb[5].mxu1  ;;  %v721_v30 = vsub.f32 0.0, %v705_v25  ;;  %v2420_v32 = vpop.f32.mrb[6].mxu0  ;;  %v668_v12 = vld [vmem:[%s3945_s3 + $0x88] sm:$0xff] }
 0x1a0   :  { %2054 = vpow2.f32 %v731_v19  ;;  %v2414_v27 = vpop.f32.mrb[6].mxu1  ;;  %v739_v29 = vmul.f32 1.442695, %v719_v24  ;;  %v2422_v33 = vpop.f32.mrb[7].mxu0  ;;  %v638_v23 = vld [vmem:[%s3945_s3 + $0x18] sm:$0xff]  ;;  %v672_v25 = vld [vmem:[%s3945_s3 + $0xa8] sm:$0xff] }
 0x1a1   :  { %2056 = vpow2.f32 %v735_v20  ;;  %v2418_v31 = vpop.f32.mrb[7].mxu1  ;;  %v743_v34 = vmul.f32 1.442695, %v721_v30  ;;  %v654_v30 = vmul.f32 %v638_v23, %v2396_v57  ;;  %v645_v23 = vld [vmem:[%s3945_s3 + $0x50] sm:$0xff] }
 0x1a2   :  { %2058 = vpow2.f32 %v739_v29  ;;  %v2858_v11 = vld [vmem:[%s3945_s3 + $0x124] ss:$8 sm:$0xf] }
 0x1a3   :  { %2060 = vpow2.f32 %v743_v34  ;;  %v670_v34 = vld [vmem:[%s3945_s3 + $0x98] sm:$0xff]  ;;  %4099 = vst [vmem:[#allocation28_spill] sm:$0xff] %v2858_v11 }
 0x1aa   :  { %v2055_v35 = vpop.eup %2054 }
 0x1ab   :  { %v2057_v36 = vpop.eup %2056  ;;  %v763_v37 = vadd.f32 1.0, %v2055_v35 }
 0x1ac   :  { %v765_v38 = vadd.f32 1.0, %v2057_v36  ;;  %v2059_v39 = vpop.eup %2058 }
 0x1ad   :  { %2062 = vrcp.f32 %v763_v37  ;;  %v767_v40 = vadd.f32 1.0, %v2059_v39  ;;  %v2061_v41 = vpop.eup %2060  ;;  %v2506_v37 = vadd.f32 %v670_v34, %v654_v30  ;;  %v674_v39 = vld [vmem:[%s3945_s3 + $0xb8] sm:$0xff]  ;;  %v661_v30 = vmul.f32 %v645_v23, %v2408_v17  ;;  %v677_v34 = vld [vmem:[%s3945_s3 + $0xd0] sm:$0xff] }
 0x1ae   :  { %2064 = vrcp.f32 %v765_v38  ;;  %v769_v42 = vadd.f32 1.0, %v2061_v41  ;;  %v649_v17 = vld [vmem:[%s3945_s3 + $0x70] sm:$0xff] }
 0x1af   :  { %2066 = vrcp.f32 %v767_v40  ;;  %v702_v41 = vand.u32 2147483647, %v2506_v37  ;;  %vm798_vm8 = vcmp.ge.f32.partialorder %v2506_v37, 0.0 }
 0x1b0   :  { %2068 = vrcp.f32 %v769_v42 }
 0x1b7   :  { %v2063_v43 = vpop.eup %2062 }
 0x1b8   :  { %v2065_v44 = vpop.eup %2064  ;;  %v811_v45 = vsub.f32 1.0, %v2063_v43 }
 0x1b9   :  { %v813_v46 = vsub.f32 1.0, %v2065_v44  ;;  %v2067_v49 = vpop.eup %2066 }
 0x1ba   :  { %v827_v47 = vsel %vm795_vm10, %v2063_v43, %v811_v45  ;;  %v815_v52 = vsub.f32 1.0, %v2067_v49  ;;  %v2069_v53 = vpop.eup %2068 }
 0x1bb   :  { %v829_v50 = vsel %vm797_vm11, %v2065_v44, %v813_v46  ;;  %v2429_v54 = vmul.f32 %v827_v47, %v683_v60  ;;  %v817_v59 = vsub.f32 1.0, %v2069_v53 }
 0x1bc   :  { %v2427_v51 = vmul.f32 %v829_v50, %v685_v61  ;;  %v831_v58 = vsel %vm799_vm12, %v2067_v49, %v815_v52  ;;  %v636_v61 = vld [vmem:[%s3945_s3 + $0x8] sm:$0xff] }
 0x1bd   :  { %v2436_v62 = vmul.f32 %v831_v58, %v687_v15  ;;  %v833_v63 = vsel %vm801_vm13, %v2069_v53, %v817_v59  ;;  %v2445_v60 = vmul.f32 %v2432_v55, %v2429_v54  ;;  %v652_v10 = vmul.f32 %v636_v61, %v2394_v56 }
 0x1be   :  { %1643 = vrot.lane.b32.xlu0 %v2427_v51, %s2128_s28  ;;  %v2441_v4 = vmul.f32 %v833_v63, %v689_v16  ;;  %v640_v16 = vld [vmem:[%s3945_s3 + $0x28] sm:$0xff]  ;;  %v2473_v56 = vmul.f32 %v2452_v9, %v2427_v51 }
 0x1bf   :  { %4080 = vst [vmem:[#allocation9_spill] sm:$0xff] %v2445_v60  ;;  %v2449_v8 = vmul.f32 %v2432_v55, %v2436_v62  ;;  %v2477_v19 = vadd.f32 %v668_v12, %v652_v10  ;;  %v656_v24 = vmul.f32 %v640_v16, %v2398_v0  ;;  %v642_v0 = vld [vmem:[%s3945_s3 + $0x38] sm:$0xff] }
 0x1c0   :  { %1645 = vrot.lane.b32.xlu1 %v2441_v4, %s2128_s28  ;;  %v2466_v15 = vmul.f32 %v2452_v9, %v2441_v4  ;;  %4084 = vst [vmem:[#allocation13_spill] sm:$0xff] %v2473_v56  ;;  %v658_v38 = vmul.f32 %v642_v0, %v2400_v2  ;;  %v718_v2 = vsub.f32 0.0, %v702_v41  ;;  %v643_v0 = vld [vmem:[%s3945_s3 + $0x40] sm:$0xff] }
 0x1c1   :  { %4081 = vst [vmem:[#allocation10_spill] sm:$0xff] %v2449_v8  ;;  %v700_v29 = vand.u32 2147483647, %v2477_v19  ;;  %v2499_v35 = vadd.f32 %v672_v25, %v656_v24  ;;  %vm796_vm14 = vcmp.ge.f32.partialorder %v2477_v19, 0.0  ;;  %v2871_v8 = vrot.slane %v2858_v11, %v2184_v7 }
 0x1c2   :  { %1627 = vrot.lane.b32.xlu0 %v2429_v54, %s2128_s28  ;;  %4083 = vst [vmem:[#allocation12_spill] sm:$0xff] %v2466_v15  ;;  %v2520_v43 = vadd.f32 %v674_v39, %v658_v38  ;;  %v737_v46 = vmul.f32 1.442695, %v718_v2  ;;  %v665_v38 = vmul.f32 %v649_v17, %v2414_v27  ;;  %v675_v39 = vld [vmem:[%s3945_s3 + $0xc0] sm:$0xff] }
 0x1c3   :  { %v716_v36 = vsub.f32 0.0, %v700_v29  ;;  %v704_v57 = vand.u32 2147483647, %v2499_v35  ;;  %vm800_vm15 = vcmp.ge.f32.partialorder %v2499_v35, 0.0 }
 0x1c4   :  { %1629 = vrot.lane.b32.xlu1 %v2436_v62, %s2128_s28  ;;  %v706_v45 = vand.u32 2147483647, %v2520_v43  ;;  %vm802_vm9 = vcmp.ge.f32.partialorder %v2520_v43, 0.0 }
 0x1c5   :  { %v733_v40 = vmul.f32 1.442695, %v716_v36  ;;  %v720_v42 = vsub.f32 0.0, %v704_v57  ;;  %v659_v57 = vmul.f32 %v643_v0, %v2410_v18  ;;  %v647_v18 = vld [vmem:[%s3945_s3 + $0x60] sm:$0xff] }
 0x1c6   :  { %859 = vrot.lane.b32.xlu0 %v2429_v54, %s2123_s23  ;;  %v722_v47 = vsub.f32 0.0, %v706_v45  ;;  %v663_v45 = vmul.f32 %v647_v18, %v2420_v32  ;;  %v644_v18 = vld [vmem:[%s3945_s3 + $0x48] sm:$0xff] }
 0x1c7   :  { %2070 = vpow2.f32 %v733_v40  ;;  %v741_v44 = vmul.f32 1.442695, %v720_v42  ;;  %v681_v42 = vld [vmem:[%s3945_s3 + $0xf0] sm:$0xff]  ;;  %v2605_v2 = vadd.f32 %v675_v39, %v659_v57 }
 0x1c8   :  { %861 = vrot.lane.b32.xlu1 %v2436_v62, %s2123_s23  ;;  %v745_v48 = vmul.f32 1.442695, %v722_v47 }
 0x1c9   :  { %2072 = vpow2.f32 %v741_v44  ;;  %v2612_v44 = vadd.f32 %v681_v42, %v665_v38  ;;  %vm803_vm11 = vcmp.ge.f32.partialorder %v2605_v2, 0.0 }
 0x1ca   :  { %875 = vrot.lane.b32.xlu0 %v2427_v51, %s2123_s23  ;;  %2074 = vpow2.f32 %v737_v46  ;;  %v679_v46 = vld [vmem:[%s3945_s3 + $0xe0] sm:$0xff] }
 0x1cb   :  { %2076 = vpow2.f32 %v745_v48  ;;  %vm809_vm12 = vcmp.ge.f32.partialorder %v2612_v44, 0.0 }
 0x1cc   :  { %877 = vrot.lane.b32.xlu1 %v2441_v4, %s2123_s23 }
 0x1ce   :  { %961 = vrot.lane.b32.xlu0 %v2429_v54, %s2122_s18 }
 0x1d0   :  { %963 = vrot.lane.b32.xlu1 %v2436_v62, %s2122_s18 }
 0x1d1   :  { %v2071_v49 = vpop.eup %2070 }
 0x1d2   :  { %977 = vrot.lane.b32.xlu0 %v2427_v51, %s2122_s18  ;;  %v764_v50 = vadd.f32 1.0, %v2071_v49  ;;  %v707_v49 = vand.u32 2147483647, %v2605_v2 }
 0x1d3   :  { %v2073_v52 = vpop.eup %2072 }
 0x1d4   :  { %979 = vrot.lane.b32.xlu1 %v2441_v4, %s2122_s18  ;;  %2078 = vrcp.f32 %v764_v50  ;;  %v2075_v53 = vpop.eup %2074  ;;  %v768_v58 = vadd.f32 1.0, %v2073_v52  ;;  %v2625_v50 = vadd.f32 %v679_v46, %v663_v45 }
 0x1d5   :  { %v766_v59 = vadd.f32 1.0, %v2075_v53  ;;  %v2077_v61 = vpop.eup %2076  ;;  %v723_v53 = vsub.f32 0.0, %v707_v49  ;;  %v676_v49 = vld [vmem:[%s3945_s3 + $0xc8] sm:$0xff] }
 0x1d6   :  { %1063 = vrot.lane.b32.xlu0 %v2429_v54, %s2124_s24  ;;  %2080 = vrcp.f32 %v768_v58  ;;  %v770_v63 = vadd.f32 1.0, %v2077_v61  ;;  %vm807_vm13 = vcmp.ge.f32.partialorder %v2625_v50, 0.0 }
 0x1d7   :  { %2082 = vrcp.f32 %v766_v59  ;;  %v711_v59 = vand.u32 2147483647, %v2625_v50  ;;  %v747_v61 = vmul.f32 1.442695, %v723_v53 }
 0x1d8   :  { %1065 = vrot.lane.b32.xlu1 %v2436_v62, %s2124_s24  ;;  %2084 = vrcp.f32 %v770_v63 }
 0x1d9   :  { %v727_v63 = vsub.f32 0.0, %v711_v59 }
 0x1da   :  { %1079 = vrot.lane.b32.xlu0 %v2427_v51, %s2124_s24 }
 0x1dc   :  { %1081 = vrot.lane.b32.xlu1 %v2441_v4, %s2124_s24 }
 0x1de   :  { %1165 = vrot.lane.b32.xlu0 %v2429_v54, %s2121_s17  ;;  %v2079_v10 = vpop.eup %2078 }
 0x1df   :  { %v812_v12 = vsub.f32 1.0, %v2079_v10 }
 0x1e0   :  { %1167 = vrot.lane.b32.xlu1 %v2436_v62, %s2121_s17  ;;  %v2081_v16 = vpop.eup %2080 }
 0x1e1   :  { %v828_v24 = vsel %vm796_vm14, %v2079_v10, %v812_v12  ;;  %v2083_v25 = vpop.eup %2082  ;;  %v816_v29 = vsub.f32 1.0, %v2081_v16  ;;  %v755_v10 = vmul.f32 1.442695, %v727_v63  ;;  %v680_v63 = vld [vmem:[%s3945_s3 + $0xe8] sm:$0xff] }
 0x1e2   :  { %1181 = vrot.lane.b32.xlu0 %v2427_v51, %s2121_s17  ;;  %v814_v36 = vsub.f32 1.0, %v2083_v25 }
 0x1e4   :  { %1183 = vrot.lane.b32.xlu1 %v2441_v4, %s2121_s17  ;;  %v830_v40 = vsel %vm798_vm8, %v2083_v25, %v814_v36 }
 0x1e6   :  { %1337 = vrot.lane.b32.xlu0 %v2427_v51, %s2125_s25 }
 0x1e8   :  { %1339 = vrot.lane.b32.xlu1 %v2441_v4, %s2125_s25 }
 0x1ea   :  { %1321 = vrot.lane.b32.xlu0 %v2429_v54, %s2125_s25 }
 0x1ec   :  { %1323 = vrot.lane.b32.xlu1 %v2436_v62, %s2125_s25 }
 0x1ee   :  { %1439 = vrot.lane.b32.xlu0 %v2427_v51, %s2127_s27 }
 0x1f0   :  { %1441 = vrot.lane.b32.xlu1 %v2441_v4, %s2127_s27 }
 0x1f2   :  { %1423 = vrot.lane.b32.xlu0 %v2429_v54, %s2127_s27 }
 0x1f4   :  { %1425 = vrot.lane.b32.xlu1 %v2436_v62, %s2127_s27 }
 0x1f6   :  { %1541 = vrot.lane.b32.xlu0 %v2427_v51, %s2126_s26  ;;  %v2569_v51 = vmul.f32 %v828_v24, %v2477_v19  ;;  %v2583_v19 = vadd.f32 %v677_v34, %v661_v30 }
 0x1f8   :  { %1543 = vrot.lane.b32.xlu1 %v2441_v4, %s2126_s26  ;;  %4085 = vst [vmem:[#allocation14_spill] sm:$0xff] %v2569_v51  ;;  %v2085_v4 = vpop.eup %2084  ;;  %v709_v27 = vand.u32 2147483647, %v2583_v19  ;;  %vm805_vm10 = vcmp.ge.f32.partialorder %v2583_v19, 0.0 }
 0x1fa   :  { %1525 = vrot.lane.b32.xlu0 %v2429_v54, %s2126_s26  ;;  %v832_v54 = vsel %vm800_vm15, %v2081_v16, %v816_v29  ;;  %v725_v48 = vsub.f32 0.0, %v709_v27 }
 0x1fb   :  { %v2594_v41 = vmul.f32 %v832_v54, %v2499_v35  ;;  %v2610_v35 = vmul.f32 %v830_v40, %v2506_v37  ;;  %v713_v37 = vand.u32 2147483647, %v2612_v44 }
 0x1fc   :  { %1527 = vrot.lane.b32.xlu1 %v2436_v62, %s2126_s26  ;;  %v818_v62 = vsub.f32 1.0, %v2085_v4  ;;  %v751_v52 = vmul.f32 1.442695, %v725_v48  ;;  %v660_v48 = vmul.f32 %v644_v18, %v2416_v28  ;;  %v648_v28 = vld [vmem:[%s3945_s3 + $0x68] sm:$0xff] }
 0x1fd   :  { %4086 = vst [vmem:[#allocation15_spill] sm:$0xff] %v2594_v41  ;;  %4087 = vst [vmem:[#allocation16_spill] sm:$0xff] %v2610_v35  ;;  %v729_v58 = vsub.f32 0.0, %v713_v37 }
 0x1fe   :  { %1635 = vrot.lane.b32.xlu0 %v2569_v51, %s2128_s28  ;;  %v834_v47 = vsel %vm802_vm9, %v2085_v4, %v818_v62  ;;  %2086 = vpow2.f32 %v751_v52  ;;  %v2717_v59 = vadd.f32 %v676_v49, %v660_v48 }
 0x1ff   :  { %v2628_v32 = vmul.f32 %v834_v47, %v2520_v43  ;;  %v759_v43 = vmul.f32 1.442695, %v729_v58  ;;  %2088 = vpow2.f32 %v747_v61 }
 0x200   :  { %1637 = vrot.lane.b32.xlu1 %v2594_v41, %s2128_s28  ;;  %vm804_vm14 = vcmp.ge.f32.partialorder %v2717_v59, 0.0 }
 0x201   :  { %2090 = vpow2.f32 %v759_v43 }
 0x202   :  { %867 = vrot.lane.b32.xlu0 %v2569_v51, %s2123_s23  ;;  %2092 = vpow2.f32 %v755_v10 }
 0x204   :  { %869 = vrot.lane.b32.xlu1 %v2594_v41, %s2123_s23 }
 0x206   :  { %883 = vrot.lane.b32.xlu0 %v2610_v35, %s2123_s23 }
 0x208   :  { %885 = vrot.lane.b32.xlu1 %v2628_v32, %s2123_s23  ;;  %v2087_v12 = vpop.eup %2086 }
 0x209   :  { %v773_v16 = vadd.f32 1.0, %v2087_v12  ;;  %v2089_v23 = vpop.eup %2088 }
 0x20a   :  { %969 = vrot.lane.b32.xlu0 %v2569_v51, %s2122_s18  ;;  %v771_v25 = vadd.f32 1.0, %v2089_v23 }
 0x20b   :  { %v2091_v24 = vpop.eup %2090  ;;  %2094 = vrcp.f32 %v773_v16  ;;  %v708_v16 = vand.u32 2147483647, %v2717_v59 }
 0x20c   :  { %971 = vrot.lane.b32.xlu1 %v2594_v41, %s2122_s18  ;;  %v777_v29 = vadd.f32 1.0, %v2091_v24  ;;  %v2093_v30 = vpop.eup %2092  ;;  %2096 = vrcp.f32 %v771_v25 }
 0x20d   :  { %v775_v34 = vadd.f32 1.0, %v2093_v30  ;;  %v682_v30 = vld [vmem:[%s3945_s3 + $0xf8] sm:$0xff] }
 0x20e   :  { %985 = vrot.lane.b32.xlu0 %v2610_v35, %s2122_s18  ;;  %2098 = vrcp.f32 %v777_v29 }
 0x20f   :  { %2100 = vrcp.f32 %v775_v34  ;;  %v724_v34 = vsub.f32 0.0, %v708_v16 }
 0x210   :  { %987 = vrot.lane.b32.xlu1 %v2628_v32, %s2122_s18 }
 0x212   :  { %1071 = vrot.lane.b32.xlu0 %v2569_v51, %s2124_s24 }
 0x214   :  { %1073 = vrot.lane.b32.xlu1 %v2594_v41, %s2124_s24 }
 0x215   :  { %v2095_v0 = vpop.eup %2094 }
 0x216   :  { %1087 = vrot.lane.b32.xlu0 %v2610_v35, %s2124_s24  ;;  %v821_v36 = vsub.f32 1.0, %v2095_v0  ;;  %v2097_v17 = vpop.eup %2096 }
 0x217   :  { %v819_v38 = vsub.f32 1.0, %v2097_v17 }
 0x218   :  { %1089 = vrot.lane.b32.xlu1 %v2628_v32, %s2124_s24  ;;  %v2099_v54 = vpop.eup %2098  ;;  %v837_v57 = vsel %vm805_vm10, %v2095_v0, %v821_v36  ;;  %vm1825_vm10 = vcmask 261120  }
 0x219   :  { %v825_v39 = vsub.f32 1.0, %v2099_v54  ;;  %v2101_v40 = vpop.eup %2100  ;;  %v2681_v42 = vmul.f32 %v837_v57, %v2583_v19  ;;  %v835_v27 = vsel %vm803_vm11, %v2097_v17, %v819_v38  ;;  %v749_v57 = vmul.f32 1.442695, %v724_v34 }
 0x21a   :  { %1173 = vrot.lane.b32.xlu0 %v2569_v51, %s2121_s17  ;;  %v823_v47 = vsub.f32 1.0, %v2101_v40  ;;  %v2697_v19 = vmul.f32 %v835_v27, %v2605_v2  ;;  %v646_v2 = vld [vmem:[%s3945_s3 + $0x58] sm:$0xff] }
 0x21b   :  { %4089 = vst [vmem:[#allocation18_spill] sm:$0xff] %v2681_v42  ;;  %v841_v46 = vsel %vm809_vm12, %v2099_v54, %v825_v39  ;;  %v662_v12 = vmul.f32 %v646_v2, %v2412_v26  ;;  %2102 = vpow2.f32 %v749_v57 }
 0x21c   :  { %1175 = vrot.lane.b32.xlu1 %v2594_v41, %s2121_s17  ;;  %4092 = vst [vmem:[#allocation21_spill] sm:$0xff] %v2697_v19  ;;  %v2705_v52 = vmul.f32 %v841_v46, %v2612_v44  ;;  %v839_v58 = vsel %vm807_vm13, %v2101_v40, %v823_v47  ;;  %v664_v44 = vmul.f32 %v648_v28, %v2422_v33  ;;  %v678_v33 = vld [vmem:[%s3945_s3 + $0xd8] sm:$0xff] }
 0x21d   :  { %v2725_v43 = vmul.f32 %v839_v58, %v2625_v50  ;;  %v650_v50 = vld [vmem:[%s3945_s3 + $0x78] sm:$0xff]  ;;  %v2750_v25 = vadd.f32 %v678_v33, %v662_v12 }
 0x21e   :  { %1189 = vrot.lane.b32.xlu0 %v2610_v35, %s2121_s17  ;;  %4093 = vst [vmem:[#allocation22_spill] sm:$0xff] %v2705_v52  ;;  %v2744_v23 = vadd.f32 %v680_v63, %v664_v44  ;;  %v666_v29 = vmul.f32 %v650_v50, %v2418_v31 }
 0x21f   :  { %4095 = vst [vmem:[#allocation24_spill] sm:$0xff] %v2725_v43  ;;  %v710_v54 = vand.u32 2147483647, %v2750_v25  ;;  %vm806_vm8 = vcmp.ge.f32.partialorder %v2750_v25, 0.0 }
 0x220   :  { %1191 = vrot.lane.b32.xlu1 %v2628_v32, %s2121_s17  ;;  %v712_v0 = vand.u32 2147483647, %v2744_v23  ;;  %v2766_v31 = vadd.f32 %v682_v30, %v666_v29  ;;  %vm808_vm15 = vcmp.ge.f32.partialorder %v2744_v23, 0.0 }
 0x221   :  { %v726_v18 = vsub.f32 0.0, %v710_v54 }
 0x222   :  { %1329 = vrot.lane.b32.xlu0 %v2569_v51, %s2125_s25  ;;  %v728_v38 = vsub.f32 0.0, %v712_v0  ;;  %v714_v27 = vand.u32 2147483647, %v2766_v31  ;;  %vm810_vm9 = vcmp.ge.f32.partialorder %v2766_v31, 0.0 }
 0x223   :  { %v753_v49 = vmul.f32 1.442695, %v726_v18 }
 0x224   :  { %1331 = vrot.lane.b32.xlu1 %v2594_v41, %s2125_s25  ;;  %v757_v46 = vmul.f32 1.442695, %v728_v38  ;;  %v730_v28 = vsub.f32 0.0, %v714_v27 }
 0x225   :  { %v2103_v12 = vpop.eup %2102 }
 0x226   :  { %1345 = vrot.lane.b32.xlu0 %v2610_v35, %s2125_s25  ;;  %2104 = vpow2.f32 %v757_v46  ;;  %v761_v44 = vmul.f32 1.442695, %v730_v28  ;;  %v772_v50 = vadd.f32 1.0, %v2103_v12 }
 0x227   :  { %2106 = vpow2.f32 %v753_v49 }
 0x228   :  { %1347 = vrot.lane.b32.xlu1 %v2628_v32, %s2125_s25  ;;  %2108 = vpow2.f32 %v761_v44 }
 0x229   :  { %2110 = vrcp.f32 %v772_v50 }
 0x22a   :  { %1431 = vrot.lane.b32.xlu0 %v2569_v51, %s2127_s27 }
 0x22c   :  { %1433 = vrot.lane.b32.xlu1 %v2594_v41, %s2127_s27 }
 0x22e   :  { %1447 = vrot.lane.b32.xlu0 %v2610_v35, %s2127_s27 }
 0x230   :  { %v2672_v4 = vpop.permute.xlu0 %1643  ;;  %1449 = vrot.lane.b32.xlu1 %v2628_v32, %s2127_s27  ;;  %v2105_v30 = vpop.eup %2104 }
 0x231   :  { %4088 = vst [vmem:[#allocation17_spill] sm:$0xff] %v2672_v4  ;;  %v2107_v34 = vpop.eup %2106  ;;  %v776_v54 = vadd.f32 1.0, %v2105_v30 }
 0x232   :  { %1533 = vrot.lane.b32.xlu0 %v2569_v51, %s2126_s26  ;;  %v2688_v45 = vpop.permute.xlu1 %1645  ;;  %v774_v38 = vadd.f32 1.0, %v2107_v34  ;;  %v2109_v18 = vpop.eup %2108 }
 0x233   :  { %4091 = vst [vmem:[#allocation20_spill] sm:$0xff] %v2688_v45  ;;  %2112 = vrcp.f32 %v776_v54  ;;  %v778_v49 = vadd.f32 1.0, %v2109_v18  ;;  %v2111_v12 = vpop.eup %2110 }
 0x234   :  { %v2686_v62 = vpop.permute.xlu0 %1627  ;;  %1535 = vrot.lane.b32.xlu1 %v2594_v41, %s2126_s26  ;;  %2114 = vrcp.f32 %v774_v38  ;;  %v820_v30 = vsub.f32 1.0, %v2111_v12 }
 0x235   :  { %4090 = vst [vmem:[#allocation19_spill] sm:$0xff] %v2686_v62  ;;  %2116 = vrcp.f32 %v778_v49 }
 0x236   :  { %1647 = vrot.lane.b32.xlu0 %v2681_v42, %s2128_s28  ;;  %v2710_v53 = vpop.permute.xlu1 %1629  ;;  %v836_v49 = vsel %vm804_vm14, %v2111_v12, %v820_v30  ;;  %v2028_v12 = vld [vmem:[%s3945_s3 + $0x104] ss:$8 sm:$0xf] }
 0x237   :  { %4094 = vst [vmem:[#allocation23_spill] sm:$0xff] %v2710_v53  ;;  %v2864_v3 = vmul.f32 %v836_v49, %v2717_v59  ;;  %v2876_v9 = vrot.slane %v2028_v12, %v2198_v13  ;;  %v2880_v59 = vrot.slane %v2858_v11, %v2181_v6  ;;  %v2895_v41 = vrot.slane %v2028_v12, %v2181_v6 }
 0x238   :  { %v2702_v37 = vpop.permute.xlu0 %859  ;;  %1649 = vrot.lane.b32.xlu1 %v2705_v52, %s2128_s28 }
 0x239   :  { %4100 = vst [vmem:[#allocation29_spill] sm:$0xff] %v2864_v3  ;;  %4102 = vst [vmem:[#allocation31_spill] sm:$0xff] %v2880_v59 }
 0x23a   :  { %1631 = vrot.lane.b32.xlu0 %v2697_v19, %s2128_s28  ;;  %v2730_v10 = vpop.permute.xlu1 %861 }
 0x23c   :  { %v2722_v61 = vpop.permute.xlu0 %875  ;;  %1633 = vrot.lane.b32.xlu1 %v2725_v43, %s2128_s28 }
 0x23d   :  { %v2113_v54 = vpop.eup %2112 }
 0x23e   :  { %863 = vrot.lane.b32.xlu0 %v2697_v19, %s2123_s23  ;;  %v2748_v26 = vpop.permute.xlu1 %877  ;;  %v2115_v18 = vpop.eup %2114  ;;  %v824_v20 = vsub.f32 1.0, %v2113_v54 }
 0x23f   :  { %v822_v30 = vsub.f32 1.0, %v2115_v18  ;;  %v2117_v56 = vpop.eup %2116 }
 0x240   :  { %v2746_v24 = vpop.permute.xlu0 %961  ;;  %865 = vrot.lane.b32.xlu1 %v2725_v43, %s2123_s23  ;;  %v840_v60 = vsel %vm808_vm15, %v2113_v54, %v824_v20  ;;  %v826_v54 = vsub.f32 1.0, %v2117_v56 }
 0x241   :  { %v838_v20 = vsel %vm806_vm8, %v2115_v18, %v822_v30  ;;  %v2892_v51 = vmul.f32 %v840_v60, %v2744_v23  ;;  %v2901_v18 = vrot.slane %v2028_v12, %v2201_v14 }
 0x242   :  { %879 = vrot.lane.b32.xlu0 %v2681_v42, %s2123_s23  ;;  %v2763_v17 = vpop.permute.xlu1 %963 }
 0x243   :  { %4103 = vst [vmem:[#allocation32_spill] sm:$0xff] %v2892_v51 }
 0x244   :  { %v2761_v36 = vpop.permute.xlu0 %977  ;;  %881 = vrot.lane.b32.xlu1 %v2705_v52, %s2123_s23 }
 0x246   :  { %965 = vrot.lane.b32.xlu0 %v2697_v19, %s2122_s18  ;;  %v2774_v40 = vpop.permute.xlu1 %979 }
 0x248   :  { %v2772_v39 = vpop.permute.xlu0 %1063  ;;  %967 = vrot.lane.b32.xlu1 %v2725_v43, %s2122_s18 }
 0x24a   :  { %981 = vrot.lane.b32.xlu0 %v2681_v42, %s2122_s18  ;;  %v2783_v48 = vpop.permute.xlu1 %1065 }
 0x24c   :  { %v2781_v47 = vpop.permute.xlu0 %1079  ;;  %983 = vrot.lane.b32.xlu1 %v2705_v52, %s2122_s18 }
 0x24e   :  { %1067 = vrot.lane.b32.xlu0 %v2697_v19, %s2124_s24  ;;  %v2791_v2 = vpop.permute.xlu1 %1081 }
 0x250   :  { %v2789_v58 = vpop.permute.xlu0 %1165  ;;  %1069 = vrot.lane.b32.xlu1 %v2725_v43, %s2124_s24 }
 0x252   :  { %1083 = vrot.lane.b32.xlu0 %v2681_v42, %s2124_s24  ;;  %v2799_v33 = vpop.permute.xlu1 %1167 }
 0x254   :  { %v2797_v63 = vpop.permute.xlu0 %1181  ;;  %1085 = vrot.lane.b32.xlu1 %v2705_v52, %s2124_s24 }
 0x256   :  { %1169 = vrot.lane.b32.xlu0 %v2697_v19, %s2121_s17  ;;  %v2807_v29 = vpop.permute.xlu1 %1183 }
 0x258   :  { %v2805_v16 = vpop.permute.xlu0 %1337  ;;  %1171 = vrot.lane.b32.xlu1 %v2725_v43, %s2121_s17 }
 0x25a   :  { %1185 = vrot.lane.b32.xlu0 %v2681_v42, %s2121_s17  ;;  %v2815_v57 = vpop.permute.xlu1 %1339 }
 0x25c   :  { %v2813_v0 = vpop.permute.xlu0 %1321  ;;  %1187 = vrot.lane.b32.xlu1 %v2705_v52, %s2121_s17 }
 0x25e   :  { %1341 = vrot.lane.b32.xlu0 %v2681_v42, %s2125_s25  ;;  %v2823_v46 = vpop.permute.xlu1 %1323 }
 0x260   :  { %v2821_v27 = vpop.permute.xlu0 %1439  ;;  %1343 = vrot.lane.b32.xlu1 %v2705_v52, %s2125_s25 }
 0x262   :  { %1325 = vrot.lane.b32.xlu0 %v2697_v19, %s2125_s25  ;;  %v2831_v44 = vpop.permute.xlu1 %1441 }
 0x264   :  { %v2829_v28 = vpop.permute.xlu0 %1423  ;;  %1327 = vrot.lane.b32.xlu1 %v2725_v43, %s2125_s25 }
 0x266   :  { %1443 = vrot.lane.b32.xlu0 %v2681_v42, %s2127_s27  ;;  %v2839_v34 = vpop.permute.xlu1 %1425 }
 0x268   :  { %v2837_v50 = vpop.permute.xlu0 %1541  ;;  %1445 = vrot.lane.b32.xlu1 %v2705_v52, %s2127_s27 }
 0x269   :  { %4096 = vst [vmem:[#allocation25_spill] sm:$0xff] %v2837_v50 }
 0x26a   :  { %1427 = vrot.lane.b32.xlu0 %v2697_v19, %s2127_s27  ;;  %v2848_v21 = vpop.permute.xlu1 %1543 }
 0x26b   :  { %4098 = vst [vmem:[#allocation27_spill] sm:$0xff] %v2848_v21 }
 0x26c   :  { %v2846_v38 = vpop.permute.xlu0 %1525  ;;  %1429 = vrot.lane.b32.xlu1 %v2725_v43, %s2127_s27 }
 0x26d   :  { %4097 = vst [vmem:[#allocation26_spill] sm:$0xff] %v2846_v38 }
 0x26e   :  { %1545 = vrot.lane.b32.xlu0 %v2681_v42, %s2126_s26  ;;  %v2867_v15 = vpop.permute.xlu1 %1527 }
 0x26f   :  { %4101 = vst [vmem:[#allocation30_spill] sm:$0xff] %v2867_v15 }
 0x270   :  { %v1636_v1 = vpop.permute.xlu0 %1635  ;;  %1547 = vrot.lane.b32.xlu1 %v2705_v52, %s2126_s26 }
 0x271   :  { %v1667_v49 = vsel %vm427_vm7, %v2686_v62, %v1636_v1  ;;  %v1663_v42 = vsel %vm427_vm7, %v1636_v1, %v2672_v4 }
 0x272   :  { %1639 = vrot.lane.b32.xlu0 %v2864_v3, %s2128_s28  ;;  %v1638_v11 = vpop.permute.xlu1 %1637  ;;  %v1697_v30 = vmul.f32 %v2871_v8, %v1667_v49  ;;  %v1698_v4 = vmul.f32 %v2880_v59, %v1663_v42 }
 0x273   :  { %v1664_v1 = vsel %vm427_vm7, %v1638_v11, %v2688_v45  ;;  %v1668_v60 = vsel %vm427_vm7, %v2710_v53, %v1638_v11  ;;  %v2924_v11 = vmul.f32 %v838_v20, %v2750_v25 }
 0x274   :  { %v868_v55 = vpop.permute.xlu0 %867  ;;  %v1701_v52 = vmul.f32 %v2871_v8, %v1668_v60  ;;  %v1702_v49 = vmul.f32 %v2880_v59, %v1664_v1  ;;  %1641 = vrot.lane.b32.xlu1 %v2892_v51, %s2128_s28  ;;  %v2929_v60 = vrot.slane %v2028_v12, %v2184_v7 }
 0x275   :  { %v895_v62 = vsel %vm36_vm2, %v868_v55, %v2722_v61  ;;  %v899_v45 = vsel %vm36_vm2, %v2702_v37, %v868_v55  ;;  %4104 = vst [vmem:[#allocation33_spill] sm:$0xff] %v2924_v11 }
 0x276   :  { %v2911_v23 = vmul.f32 %v2876_v9, %v895_v62  ;;  %871 = vrot.lane.b32.xlu0 %v2864_v3, %s2123_s23  ;;  %v842_v62 = vsel %vm810_vm9, %v2117_v56, %v826_v54  ;;  %v1713_v5 = vpack.c.bf16 %v1701_v52, %v1697_v30  ;;  %v870_v42 = vpop.permute.xlu1 %869  ;;  %v1714_v55 = vpack.c.bf16 %v1702_v49, %v1698_v4  ;;  %v2029_v4 = vld [vmem:[%s3945_s3 + $0x105] ss:$8 sm:$0xf] }
 0x277   :  { %v930_v59 = vmul.f32 %v2895_v41, %v899_v45  ;;  %v896_v25 = vsel %vm36_vm2, %v870_v42, %v2748_v26  ;;  %v900_v56 = vsel %vm36_vm2, %v2730_v10, %v870_v42  ;;  %v2959_v54 = vmul.f32 %v842_v62, %v2766_v31 }
 0x278   :  { %v884_v53 = vpop.permute.xlu0 %883  ;;  %v934_v45 = vmul.f32 %v2895_v41, %v900_v56  ;;  %1870 = vmatprep.subr.bf16.mxu1 %v1714_v55  ;;  %873 = vrot.lane.b32.xlu1 %v2892_v51, %s2123_s23  ;;  %v2964_v42 = vrot.slane %v2029_v4, %v2181_v6 }
 0x279   :  { %v891_v1 = vsel %vm36_vm2, %v2722_v61, %v884_v53  ;;  %v2951_v61 = vmul.f32 %v2876_v9, %v896_v25  ;;  %v903_v12 = vsel %vm36_vm2, %v884_v53, %v2702_v37  ;;  %1871 = vmatpush1.bf16.msra.mxu1 %v1713_v5  ;;  %4105 = vst [vmem:[#allocation34_spill] sm:$0xff] %v2959_v54 }
 0x27a   :  { %v2942_v52 = vmul.f32 %v2901_v18, %v891_v1  ;;  %887 = vrot.lane.b32.xlu0 %v2924_v11, %s2123_s23  ;;  %v886_v49 = vpop.permute.xlu1 %885  ;;  %v946_v1 = vpack.c.bf16 %v934_v45, %v930_v59  ;;  %v929_v25 = vmul.f32 %v2929_v60, %v903_v12  ;;  %v2974_v53 = vrot.slane %v2029_v4, %v2198_v13 }
 0x27b   :  { %v892_v37 = vsel %vm36_vm2, %v2748_v26, %v886_v49  ;;  %v904_v5 = vsel %vm36_vm2, %v886_v49, %v2730_v10  ;;  %v2991_v45 = vrot.slane %v2029_v4, %v2184_v7 }
 0x27c   :  { %v970_v20 = vpop.permute.xlu0 %969  ;;  %v933_v31 = vmul.f32 %v2929_v60, %v904_v5  ;;  %v2980_v59 = vmul.f32 %v2901_v18, %v892_v37  ;;  %1829 = vmatprep.subr.bf16.mxu0 %v946_v1  ;;  %889 = vrot.lane.b32.xlu1 %v2959_v54, %s2123_s23 }
 0x27d   :  { %v1001_v62 = vsel %vm80_vm1, %v2746_v24, %v970_v20  ;;  %v997_v10 = vsel %vm80_vm1, %v970_v20, %v2761_v36  ;;  %4106 = vst [vmem:[#allocation35_spill] sm:$0xff] %v2991_v45 }
 0x27e   :  { %973 = vrot.lane.b32.xlu0 %v2864_v3, %s2122_s18  ;;  %v945_v55 = vpack.c.bf16 %v933_v31, %v929_v25  ;;  %v972_v56 = vpop.permute.xlu1 %971  ;;  %v2996_v49 = vmul.f32 %v2964_v42, %v1001_v62  ;;  %v3005_v25 = vrot.slane %v2029_v4, %v2201_v14  ;;  %v3010_v37 = vmul.f32 %v2974_v53, %v997_v10  ;;  %v2030_v4 = vld [vmem:[%s3945_s3 + $0x106] ss:$8 sm:$0xf] }
 0x27f   :  { %v998_v1 = vsel %vm80_vm1, %v972_v56, %v2774_v40  ;;  %v1002_v20 = vsel %vm80_vm1, %v2763_v17, %v972_v56  ;;  %v3040_v12 = vrot.slane %v2030_v4, %v2181_v6 }
 0x280   :  { %v986_v26 = vpop.permute.xlu0 %985  ;;  %4107 = vst [vmem:[#allocation36_spill] sm:$0xff] %v3005_v25  ;;  %4108 = vst [vmem:[#allocation37_spill] sm:$0xff] %v3010_v37  ;;  %v3013_v5 = vmul.f32 %v2964_v42, %v1002_v20  ;;  %v3016_v31 = vmul.f32 %v2974_v53, %v998_v1  ;;  %1830 = vmatpush1.bf16.msra.mxu0 %v945_v55  ;;  %975 = vrot.lane.b32.xlu1 %v2892_v51, %s2122_s18 }
 0x281   :  { %v993_v62 = vsel %vm80_vm1, %v2761_v36, %v986_v26  ;;  %v1005_v10 = vsel %vm80_vm1, %v986_v26, %v2746_v24  ;;  %4110 = vst [vmem:[#allocation39_spill] sm:$0xff] %v3040_v12  ;;  %v3043_v24 = vrot.slane %v2030_v4, %v2198_v13 }
 0x282   :  { %989 = vrot.lane.b32.xlu0 %v2924_v11, %s2122_s18  ;;  %4109 = vst [vmem:[#allocation38_spill] sm:$0xff] %v3016_v31  ;;  %v988_v55 = vpop.permute.xlu1 %987  ;;  %v3048_v26 = vmul.f32 %v2991_v45, %v1005_v10  ;;  %v3051_v1 = vmul.f32 %v3005_v25, %v993_v62 }
 0x283   :  { %v994_v30 = vsel %vm80_vm1, %v2774_v40, %v988_v55  ;;  %v1006_v36 = vsel %vm80_vm1, %v988_v55, %v2763_v17  ;;  %4111 = vst [vmem:[#allocation40_spill] sm:$0xff] %v3043_v24 }
 0x284   :  { %v1072_v56 = vpop.permute.xlu0 %1071  ;;  %4112 = vst [vmem:[#allocation41_spill] sm:$0xff] %v3048_v26  ;;  %v3054_v40 = vmul.f32 %v2991_v45, %v1006_v36  ;;  %v3057_v17 = vmul.f32 %v3005_v25, %v994_v30  ;;  %991 = vrot.lane.b32.xlu1 %v2959_v54, %s2122_s18  ;;  %v3078_v25 = vrot.slane %v2030_v4, %v2184_v7 }
 0x285   :  { %v1099_v55 = vsel %vm136_vm3, %v1072_v56, %v2781_v47  ;;  %v1103_v10 = vsel %vm136_vm3, %v2772_v39, %v1072_v56  ;;  %v3081_v56 = vrot.slane %v2030_v4, %v2201_v14  ;;  %v2031_v4 = vld [vmem:[%s3945_s3 + $0x107] ss:$8 sm:$0xf] }
 0x286   :  { %1075 = vrot.lane.b32.xlu0 %v2864_v3, %s2124_s24  ;;  %4113 = vst [vmem:[#allocation42_spill] sm:$0xff] %v3054_v40  ;;  %v1074_v36 = vpop.permute.xlu1 %1073  ;;  %4114 = vst [vmem:[#allocation43_spill] sm:$0xff] %v3078_v25  ;;  %v3086_v62 = vmul.f32 %v3040_v12, %v1103_v10  ;;  %v3089_v30 = vmul.f32 %v3043_v24, %v1099_v55  ;;  %v3119_v45 = vrot.slane %v2031_v4, %v2181_v6 }
 0x287   :  { %v1100_v37 = vsel %vm136_vm3, %v1074_v36, %v2791_v2  ;;  %v1104_v31 = vsel %vm136_vm3, %v2783_v48, %v1074_v36  ;;  %4115 = vst [vmem:[#allocation44_spill] sm:$0xff] %v3081_v56 }
 0x288   :  { %v1088_v20 = vpop.permute.xlu0 %1087  ;;  %4116 = vst [vmem:[#allocation45_spill] sm:$0xff] %v3089_v30  ;;  %v3092_v26 = vmul.f32 %v3040_v12, %v1104_v31  ;;  %v3095_v36 = vmul.f32 %v3043_v24, %v1100_v37  ;;  %1077 = vrot.lane.b32.xlu1 %v2892_v51, %s2124_s24  ;;  %4118 = vst [vmem:[#allocation47_spill] sm:$0xff] %v3119_v45 }
 0x289   :  { %v1095_v10 = vsel %vm136_vm3, %v2781_v47, %v1088_v20  ;;  %v1107_v55 = vsel %vm136_vm3, %v1088_v20, %v2772_v39  ;;  %v3122_v39 = vrot.slane %v2031_v4, %v2198_v13 }
 0x28a   :  { %1091 = vrot.lane.b32.xlu0 %v2924_v11, %s2124_s24  ;;  %4117 = vst [vmem:[#allocation46_spill] sm:$0xff] %v3095_v36  ;;  %v1090_v24 = vpop.permute.xlu1 %1089  ;;  %v3127_v20 = vmul.f32 %v3078_v25, %v1107_v55  ;;  %v3130_v37 = vmul.f32 %v3081_v56, %v1095_v10 }
 0x28b   :  { %v1096_v40 = vsel %vm136_vm3, %v2791_v2, %v1090_v24  ;;  %v1108_v47 = vsel %vm136_vm3, %v1090_v24, %v2783_v48  ;;  %4119 = vst [vmem:[#allocation48_spill] sm:$0xff] %v3122_v39 }
 0x28c   :  { %v1174_v31 = vpop.permute.xlu0 %1173  ;;  %4120 = vst [vmem:[#allocation49_spill] sm:$0xff] %v3127_v20  ;;  %v3133_v2 = vmul.f32 %v3078_v25, %v1108_v47  ;;  %v3136_v48 = vmul.f32 %v3081_v56, %v1096_v40  ;;  %1093 = vrot.lane.b32.xlu1 %v2959_v54, %s2124_s24  ;;  %v3157_v56 = vrot.slane %v2031_v4, %v2184_v7 }
 0x28d   :  { %v1201_v24 = vsel %vm180_vm0, %v1174_v31, %v2797_v63  ;;  %v1205_v55 = vsel %vm180_vm0, %v2789_v58, %v1174_v31  ;;  %v3160_v31 = vrot.slane %v2031_v4, %v2201_v14  ;;  %v2033_v4 = vld [vmem:[%s3945_s3 + $0x121] ss:$8 sm:$0xf] }
 0x28e   :  { %1177 = vrot.lane.b32.xlu0 %v2864_v3, %s2121_s17  ;;  %4121 = vst [vmem:[#allocation50_spill] sm:$0xff] %v3133_v2  ;;  %v1176_v47 = vpop.permute.xlu1 %1175  ;;  %4122 = vst [vmem:[#allocation51_spill] sm:$0xff] %v3157_v56  ;;  %v3165_v10 = vmul.f32 %v3119_v45, %v1205_v55  ;;  %v3168_v40 = vmul.f32 %v3122_v39, %v1201_v24  ;;  %v3198_v25 = vrot.slane %v2033_v4, %v2184_v7 }
 0x28f   :  { %v1202_v30 = vsel %vm180_vm0, %v1176_v47, %v2807_v29  ;;  %v1206_v36 = vsel %vm180_vm0, %v2799_v33, %v1176_v47  ;;  %4123 = vst [vmem:[#allocation52_spill] sm:$0xff] %v3160_v31 }
 0x290   :  { %v1190_v12 = vpop.permute.xlu0 %1189  ;;  %4124 = vst [vmem:[#allocation53_spill] sm:$0xff] %v3168_v40  ;;  %v3171_v20 = vmul.f32 %v3119_v45, %v1206_v36  ;;  %v3174_v47 = vmul.f32 %v3122_v39, %v1202_v30  ;;  %1179 = vrot.lane.b32.xlu1 %v2892_v51, %s2121_s17  ;;  %4126 = vst [vmem:[#allocation55_spill] sm:$0xff] %v3198_v25 }
 0x291   :  { %v1197_v55 = vsel %vm180_vm0, %v2797_v63, %v1190_v12  ;;  %v1209_v24 = vsel %vm180_vm0, %v1190_v12, %v2789_v58  ;;  %v3201_v58 = vrot.slane %v2033_v4, %v2181_v6 }
 0x292   :  { %1193 = vrot.lane.b32.xlu0 %v2924_v11, %s2121_s17  ;;  %4125 = vst [vmem:[#allocation54_spill] sm:$0xff] %v3174_v47  ;;  %v1192_v39 = vpop.permute.xlu1 %1191  ;;  %v3206_v12 = vmul.f32 %v3157_v56, %v1209_v24  ;;  %v3209_v30 = vmul.f32 %v3160_v31, %v1197_v55  ;;  %v3236_v47 = vrot.slane %v2033_v4, %v2198_v13 }
 0x293   :  { %v1198_v2 = vsel %vm180_vm0, %v2807_v29, %v1192_v39  ;;  %v1210_v63 = vsel %vm180_vm0, %v1192_v39, %v2799_v33  ;;  %4127 = vst [vmem:[#allocation56_spill] sm:$0xff] %v3201_v58 }
 0x294   :  { %v1330_v36 = vpop.permute.xlu0 %1329  ;;  %4128 = vst [vmem:[#allocation57_spill] sm:$0xff] %v3206_v12  ;;  %v3212_v29 = vmul.f32 %v3157_v56, %v1210_v63  ;;  %v3215_v33 = vmul.f32 %v3160_v31, %v1198_v2  ;;  %1195 = vrot.lane.b32.xlu1 %v2959_v54, %s2121_s17  ;;  %4130 = vst [vmem:[#allocation59_spill] sm:$0xff] %v3236_v47 }
 0x295   :  { %v1357_v39 = vsel %vm271_vm4, %v1330_v36, %v2805_v16  ;;  %v1361_v24 = vsel %vm271_vm4, %v2813_v0, %v1330_v36  ;;  %v3239_v36 = vrot.slane %v2033_v4, %v2201_v14  ;;  %v2034_v4 = vld [vmem:[%s3945_s3 + $0x122] ss:$8 sm:$0xf] }
 0x296   :  { %1529 = vrot.lane.b32.xlu0 %v2697_v19, %s2126_s26  ;;  %4129 = vst [vmem:[#allocation58_spill] sm:$0xff] %v3212_v29  ;;  %v1332_v63 = vpop.permute.xlu1 %1331  ;;  %v3244_v55 = vmul.f32 %v3198_v25, %v1361_v24  ;;  %v3247_v2 = vmul.f32 %v3201_v58, %v1357_v39  ;;  %v3277_v29 = vrot.slane %v2034_v4, %v2184_v7 }
 0x297   :  { %v1358_v19 = vsel %vm271_vm4, %v1332_v63, %v2815_v57  ;;  %v1362_v40 = vsel %vm271_vm4, %v2823_v46, %v1332_v63  ;;  %4131 = vst [vmem:[#allocation60_spill] sm:$0xff] %v3239_v36 }
 0x298   :  { %v1346_v45 = vpop.permute.xlu0 %1345  ;;  %4132 = vst [vmem:[#allocation61_spill] sm:$0xff] %v3244_v55  ;;  %4133 = vst [vmem:[#allocation62_spill] sm:$0xff] %v3247_v2  ;;  %v3250_v12 = vmul.f32 %v3198_v25, %v1362_v40  ;;  %v3253_v63 = vmul.f32 %v3201_v58, %v1358_v19  ;;  %1531 = vrot.lane.b32.xlu1 %v2725_v43, %s2126_s26 }
 0x299   :  { %v1353_v24 = vsel %vm271_vm4, %v2805_v16, %v1346_v45  ;;  %v1365_v39 = vsel %vm271_vm4, %v1346_v45, %v2813_v0  ;;  %4136 = vst [vmem:[#allocation65_spill] sm:$0xff] %v3277_v29  ;;  %v3280_v0 = vrot.slane %v2034_v4, %v2181_v6 }
 0x29a   :  { %1333 = vrot.lane.b32.xlu0 %v2864_v3, %s2125_s25  ;;  %4134 = vst [vmem:[#allocation63_spill] sm:$0xff] %v3250_v12  ;;  %4135 = vst [vmem:[#allocation64_spill] sm:$0xff] %v3253_v63  ;;  %v1348_v58 = vpop.permute.xlu1 %1347  ;;  %v3285_v45 = vmul.f32 %v3236_v47, %v1353_v24  ;;  %v3288_v19 = vmul.f32 %v3239_v36, %v1365_v39  ;;  %v3325_v39 = vld [vmem:[%s3945_s3 + $0x123] ss:$8 sm:$0xf] }
 0x29b   :  { %v1354_v43 = vsel %vm271_vm4, %v2815_v57, %v1348_v58  ;;  %v1366_v16 = vsel %vm271_vm4, %v1348_v58, %v2823_v46  ;;  %4137 = vst [vmem:[#allocation66_spill] sm:$0xff] %v3280_v0  ;;  %4144 = vst [vmem:[#allocation73_spill] sm:$0xff] %v3325_v39 }
 0x29c   :  { %v1432_v40 = vpop.permute.xlu0 %1431  ;;  %4138 = vst [vmem:[#allocation67_spill] sm:$0xff] %v3285_v45  ;;  %4139 = vst [vmem:[#allocation68_spill] sm:$0xff] %v3288_v19  ;;  %v3291_v57 = vmul.f32 %v3236_v47, %v1354_v43  ;;  %v3294_v46 = vmul.f32 %v3239_v36, %v1366_v16  ;;  %1551 = vrot.lane.b32.xlu1 %v2628_v32, %s2126_s26  ;;  %v3307_v47 = vrot.slane %v2034_v4, %v2198_v13 }
 0x29d   :  { %v1459_v58 = vsel %vm327_vm6, %v1432_v40, %v2821_v27  ;;  %v1463_v24 = vsel %vm327_vm6, %v2829_v28, %v1432_v40  ;;  %v3318_v40 = vrot.slane %v2034_v4, %v2201_v14 }
 0x29e   :  { %1349 = vrot.lane.b32.xlu0 %v2924_v11, %s2125_s25  ;;  %4140 = vst [vmem:[#allocation69_spill] sm:$0xff] %v3291_v57  ;;  %4141 = vst [vmem:[#allocation70_spill] sm:$0xff] %v3294_v46  ;;  %v1434_v43 = vpop.permute.xlu1 %1433  ;;  %v3328_v16 = vmul.f32 %v3277_v29, %v1463_v24  ;;  %v3331_v13 = vmul.f32 %v3280_v0, %v1459_v58 }
 0x29f   :  { %4142 = vst [vmem:[#allocation71_spill] sm:$0xff] %v3307_v47  ;;  %v1460_v36 = vsel %vm327_vm6, %v1434_v43, %v2831_v44  ;;  %v1464_v55 = vsel %vm327_vm6, %v2839_v34, %v1434_v43  ;;  %4143 = vst [vmem:[#allocation72_spill] sm:$0xff] %v3318_v40 }
 0x2a0   :  { %v1448_v25 = vpop.permute.xlu0 %1447  ;;  %4145 = vst [vmem:[#allocation74_spill] sm:$0xff] %v3328_v16  ;;  %4146 = vst [vmem:[#allocation75_spill] sm:$0xff] %v3331_v13  ;;  %v3334_v45 = vmul.f32 %v3277_v29, %v1464_v55  ;;  %v3337_v4 = vmul.f32 %v3280_v0, %v1460_v36  ;;  %1653 = vrot.lane.b32.xlu1 %v2628_v32, %s2128_s28  ;;  %v3351_v36 = vrot.slane %v3325_v39, %v2184_v7  ;;  %v2130_v7 = vmov 1983009808  }
 0x2a1   :  { %v1455_v43 = vsel %vm327_vm6, %v2821_v27, %v1448_v25  ;;  %v1467_v24 = vsel %vm327_vm6, %v1448_v25, %v2829_v28  ;;  %v3363_v25 = vrot.slane %v3325_v39, %v2181_v6  ;;  %v1809_v58 = vunpack.c.l.s4 %v2130_v7 }
 0x2a2   :  { %1435 = vrot.lane.b32.xlu0 %v2864_v3, %s2127_s27  ;;  %4147 = vst [vmem:[#allocation76_spill] sm:$0xff] %v3334_v45  ;;  %4148 = vst [vmem:[#allocation77_spill] sm:$0xff] %v3337_v4  ;;  %v1450_v55 = vpop.permute.xlu1 %1449  ;;  %v3368_v16 = vmul.f32 %v3307_v47, %v1455_v43  ;;  %v3371_v0 = vmul.f32 %v3318_v40, %v1467_v24 }
 0x2a3   :  { %4149 = vst [vmem:[#allocation78_spill] sm:$0xff] %v3351_v36  ;;  %v1456_v27 = vsel %vm327_vm6, %v2831_v44, %v1450_v55  ;;  %v1468_v28 = vsel %vm327_vm6, %v1450_v55, %v2839_v34  ;;  %4150 = vst [vmem:[#allocation79_spill] sm:$0xff] %v3363_v25 }
 0x2a4   :  { %v1534_v57 = vpop.permute.xlu0 %1533  ;;  %4151 = vst [vmem:[#allocation80_spill] sm:$0xff] %v3368_v16  ;;  %4152 = vst [vmem:[#allocation81_spill] sm:$0xff] %v3371_v0  ;;  %v3374_v44 = vmul.f32 %v3307_v47, %v1456_v27  ;;  %v3377_v34 = vmul.f32 %v3318_v40, %v1468_v28  ;;  %1335 = vrot.lane.b32.xlu1 %v2892_v51, %s2125_s25 }
 0x2a5   :  { %v1561_v55 = vsel %vm371_vm5, %v1534_v57, %v2837_v50  ;;  %v1565_v43 = vsel %vm371_vm5, %v2846_v38, %v1534_v57  ;;  %v1810_v57 = vunpack.c.0.s8 %v1809_v58 }
 0x2a6   :  { %1451 = vrot.lane.b32.xlu0 %v2924_v11, %s2127_s27  ;;  %4153 = vst [vmem:[#allocation82_spill] sm:$0xff] %v3374_v44  ;;  %4154 = vst [vmem:[#allocation83_spill] sm:$0xff] %v3377_v34  ;;  %v1536_v27 = vpop.permute.xlu1 %1535  ;;  %v3402_v45 = vmul.f32 %v3351_v36, %v1565_v43  ;;  %v3405_v24 = vmul.f32 %v3363_v25, %v1561_v55 }
 0x2a7   :  { %v1562_v40 = vsel %vm371_vm5, %v1536_v27, %v2848_v21  ;;  %v1566_v50 = vsel %vm371_vm5, %v2867_v15, %v1536_v27 }
 0x2a8   :  { %v3387_v7 = vpop.permute.xlu0 %1647  ;;  %4156 = vst [vmem:[#allocation85_spill] sm:$0xff] %v3402_v45  ;;  %4157 = vst [vmem:[#allocation86_spill] sm:$0xff] %v3405_v24  ;;  %v3408_v28 = vmul.f32 %v3351_v36, %v1566_v50  ;;  %v3411_v16 = vmul.f32 %v3363_v25, %v1562_v40  ;;  %1351 = vrot.lane.b32.xlu1 %v2959_v54, %s2125_s25  ;;  %v4162_v50 = vld [vmem:[#allocation6_spill] sm:$0xff]  ;;  %v1729_v40 = vld [vmem:[%s3947_s2] sm:$0x3f] }
 0x2a9   :  { %4155 = vst [vmem:[#allocation84_spill] sm:$0xff] %v3387_v7  ;;  %v1813_v43 = vsub.s32 %v1810_v57, %v4162_v50 }
 0x2aa   :  { %1537 = vrot.lane.b32.xlu0 %v2864_v3, %s2126_s26  ;;  %4158 = vst [vmem:[#allocation87_spill] sm:$0xff] %v3408_v28  ;;  %4159 = vst [vmem:[#allocation88_spill] sm:$0xff] %v3411_v16  ;;  %v3419_v44 = vpop.permute.xlu1 %1649 }
 0x2ab   :  { %4161 = vst [vmem:[#allocation90_spill] sm:$0xff] %v3419_v44  ;;  %v3431_v36 = vrot.slane %v1729_v40, %v1813_v43 }
 0x2ac   :  { %v3415_v27 = vpop.permute.xlu0 %1631  ;;  %1437 = vrot.lane.b32.xlu1 %v2892_v51, %s2127_s27 }
 0x2ad   :  { %4160 = vst [vmem:[#allocation89_spill] sm:$0xff] %v3415_v27  ;;  %4163 = vst [vmem:[#allocation6_spill] sm:$0xff] %v3431_v36  ;;  %v3439_v55 = vcombine.high %v3431_v36, %v3431_v36 }
 0x2ae   :  { %1549 = vrot.lane.b32.xlu0 %v2610_v35, %s2126_s26  ;;  %v3433_v58 = vpop.permute.xlu1 %1633 }
 0x2af   :  { %1861 = vmatprep.mubr.bf16.mxu0 %v3439_v55 }
 0x2b0   :  { %v864_v25 = vpop.permute.xlu0 %863  ;;  %1453 = vrot.lane.b32.xlu1 %v2959_v54, %s2127_s27 }
 0x2b2   :  { %1651 = vrot.lane.b32.xlu0 %v2610_v35, %s2128_s28  ;;  %v3444_v50 = vpop.permute.xlu1 %865 }
 0x2b4   :  { %v880_v57 = vpop.permute.xlu0 %879  ;;  %1539 = vrot.lane.b32.xlu1 %v2892_v51, %s2126_s26 }
 0x2b6   :  { %1553 = vrot.lane.b32.xlu0 %v2924_v11, %s2126_s26  ;;  %v882_v28 = vpop.permute.xlu1 %881 }
 0x2b8   :  { %v3450_v45 = vpop.permute.xlu0 %965  ;;  %1555 = vrot.lane.b32.xlu1 %v2959_v54, %s2126_s26 }
 0x2ba   :  { %1655 = vrot.lane.b32.xlu0 %v2924_v11, %s2128_s28  ;;  %v3458_v24 = vpop.permute.xlu1 %967 }
 0x2bc   :  { %v3456_v36 = vpop.permute.xlu0 %981  ;;  %1657 = vrot.lane.b32.xlu1 %v2959_v54, %s2128_s28 }
 0x2be   :  { %v3464_v0 = vpop.permute.xlu1 %983 }
 0x2c0   :  { %v3462_v16 = vpop.permute.xlu0 %1067 }
 0x2c2   :  { %v3468_v38 = vpop.permute.xlu1 %1069 }
 0x2c4   :  { %v3466_v34 = vpop.permute.xlu0 %1083 }
 0x2c6   :  { %v3472_v29 = vpop.permute.xlu1 %1085 }
 0x2c8   :  { %v3470_v47 = vpop.permute.xlu0 %1169 }
 0x2ca   :  { %v3476_v13 = vpop.permute.xlu1 %1171 }
 0x2cc   :  { %v3474_v15 = vpop.permute.xlu0 %1185 }
 0x2ce   :  { %v3480_v21 = vpop.permute.xlu1 %1187 }
 0x2d0   :  { %v3478_v4 = vpop.permute.xlu0 %1341 }
 0x2d1   :  { %4164 = vst [vmem:[#allocation91_spill] sm:$0xff] %v3478_v4 }
 0x2d2   :  { %v3484_v12 = vpop.permute.xlu1 %1343 }
 0x2d3   :  { %4166 = vst [vmem:[#allocation93_spill] sm:$0xff] %v3484_v12 }
 0x2d4   :  { %v3482_v39 = vpop.permute.xlu0 %1325 }
 0x2d5   :  { %4165 = vst [vmem:[#allocation92_spill] sm:$0xff] %v3482_v39 }
 0x2d6   :  { %v3488_v46 = vpop.permute.xlu1 %1327 }
 0x2d7   :  { %4168 = vst [vmem:[#allocation95_spill] sm:$0xff] %v3488_v46 }
 0x2d8   :  { %v3486_v19 = vpop.permute.xlu0 %1443 }
 0x2d9   :  { %4167 = vst [vmem:[#allocation94_spill] sm:$0xff] %v3486_v19 }
 0x2da   :  { %v3492_v63 = vpop.permute.xlu1 %1445 }
 0x2db   :  { %4170 = vst [vmem:[#allocation97_spill] sm:$0xff] %v3492_v63 }
 0x2dc   :  { %v3490_v2 = vpop.permute.xlu0 %1427 }
 0x2dd   :  { %4169 = vst [vmem:[#allocation96_spill] sm:$0xff] %v3490_v2  ;;  %v4174_v2 = vld [vmem:[#allocation31_spill] sm:$0xff] }
 0x2de   :  { %v3496_v11 = vpop.permute.xlu1 %1429 }
 0x2df   :  { %4172 = vst [vmem:[#allocation99_spill] sm:$0xff] %v3496_v11  ;;  %v1807_v11 = vcombine.high %v1729_v40, %v1729_v40 }
 0x2e0   :  { %v3494_v54 = vpop.permute.xlu0 %1545 }
 0x2e1   :  { %4171 = vst [vmem:[#allocation98_spill] sm:$0xff] %v3494_v54  ;;  %v3521_v40 = vrot.slane %v1807_v11, %v1813_v43 }
 0x2e2   :  { %v3498_v4 = vpop.permute.xlu1 %1547 }
 0x2e3   :  { %4173 = vst [vmem:[#allocation100_spill] sm:$0xff] %v3498_v4 }
 0x2e4   :  { %v1640_v51 = vpop.permute.xlu0 %1639 }
 0x2e5   :  { %v1665_v39 = vsel %vm427_vm7, %v1640_v51, %v3387_v7  ;;  %v1669_v19 = vsel %vm427_vm7, %v3415_v27, %v1640_v51 }
 0x2e6   :  { %v1642_v12 = vpop.permute.xlu1 %1641  ;;  %v1705_v4 = vmul.f32 %v2871_v8, %v1669_v19  ;;  %v1706_v3 = vmul.f32 %v4174_v2, %v1665_v39 }
 0x2e7   :  { %v1666_v63 = vsel %vm427_vm7, %v1642_v12, %v3419_v44  ;;  %v1670_v54 = vsel %vm427_vm7, %v3433_v58, %v1642_v12 }
 0x2e8   :  { %v872_v46 = vpop.permute.xlu0 %871  ;;  %v1709_v7 = vmul.f32 %v2871_v8, %v1670_v54  ;;  %v1710_v35 = vmul.f32 %v4174_v2, %v1666_v63  ;;  %v4175_v63 = vpack.c.bf16 %v2980_v59, %v2942_v52 }
 0x2e9   :  { %v901_v51 = vsel %vm36_vm2, %v864_v25, %v872_v46  ;;  %v897_v11 = vsel %vm36_vm2, %v872_v46, %v880_v57 }
 0x2ea   :  { %v1717_v31 = vpack.c.bf16 %v1709_v7, %v1705_v4  ;;  %v874_v56 = vpop.permute.xlu1 %873  ;;  %v1718_v44 = vpack.c.bf16 %v1710_v35, %v1706_v3  ;;  %v938_v19 = vmul.f32 %v2895_v41, %v901_v51  ;;  %v939_v59 = vmul.f32 %v2876_v9, %v897_v11 }
 0x2eb   :  { %v902_v12 = vsel %vm36_vm2, %v3444_v50, %v874_v56  ;;  %v898_v8 = vsel %vm36_vm2, %v874_v56, %v882_v28 }
 0x2ec   :  { %v888_v27 = vpop.permute.xlu0 %887  ;;  %v942_v54 = vmul.f32 %v2895_v41, %v902_v12  ;;  %1872 = vmatprep.subr.bf16.mxu1 %v1718_v44  ;;  %v943_v41 = vmul.f32 %v2876_v9, %v898_v8  ;;  %v4177_v12 = vpack.c.bf16 %v3013_v5, %v2996_v49  ;;  %v4178_v8 = vpack.c.bf16 %v3057_v17, %v3051_v1  ;;  %v4179_v5 = vld [vmem:[#allocation35_spill] sm:$0xff]  ;;  %v4181_v17 = vld [vmem:[#allocation42_spill] sm:$0xff] }
 0x2ed   :  { %v905_v2 = vsel %vm36_vm2, %v888_v27, %v864_v25  ;;  %v893_v3 = vsel %vm36_vm2, %v880_v57, %v888_v27  ;;  %1873 = vmatpush1.bf16.msra.mxu1 %v1717_v31 }
 0x2ee   :  { %1911 = vmatprep.subr.bf16.mxu1 %v4175_v63  ;;  %v890_v56 = vpop.permute.xlu1 %889  ;;  %v950_v39 = vpack.c.bf16 %v942_v54, %v938_v19  ;;  %v937_v4 = vmul.f32 %v2929_v60, %v905_v2  ;;  %v940_v44 = vmul.f32 %v2901_v18, %v893_v3  ;;  %v951_v57 = vpack.c.bf16 %v943_v41, %v939_v59  ;;  %v4180_v63 = vld [vmem:[#allocation36_spill] sm:$0xff] }
 0x2ef   :  { %v894_v25 = vsel %vm36_vm2, %v882_v28, %v890_v56  ;;  %v906_v31 = vsel %vm36_vm2, %v890_v56, %v3444_v50  ;;  %v4176_v28 = vpack.c.bf16 %v2951_v61, %v2911_v23  ;;  %v4182_v56 = vld [vmem:[#allocation41_spill] sm:$0xff] }
 0x2f0   :  { %v974_v35 = vpop.permute.xlu0 %973  ;;  %v941_v46 = vmul.f32 %v2929_v60, %v906_v31  ;;  %v944_v52 = vmul.f32 %v2901_v18, %v894_v25  ;;  %1831 = vmatprep.subr.bf16.mxu0 %v950_v39  ;;  %2037 = vmatmul.mubr.msk.bf16.vlgmr.msra.gmra.mrb[8].mxu1 %vm1825_vm10, %v3521_v40  ;;  %v4183_v39 = vpack.c.bf16 %v4181_v17, %v4182_v56  ;;  %v2118_v17 = vld [vmem:[%s3945_s3 + $0x120] ss:$8 sm:$0xf] }
 0x2f1   :  { %v1003_v7 = vsel %vm80_vm1, %v3450_v45, %v974_v35  ;;  %1912 = vmatpush1.bf16.msra.mxu1 %v4176_v28  ;;  %1943 = vmatprep.mubr.bf16.mxu1 %v3439_v55  ;;  %v4187_v28 = vld [vmem:[#allocation39_spill] sm:$0xff]  ;;  %v1276_v56 = vrot.slane %v2118_v17, %v2181_v6  ;;  %v4200_v6 = vpack.c.bf16 %v3171_v20, %v3165_v10 }
 0x2f2   :  { %v949_v60 = vpack.c.bf16 %v941_v46, %v937_v4  ;;  %v976_v43 = vpop.permute.xlu1 %975  ;;  %v952_v18 = vpack.c.bf16 %v944_v52, %v940_v44  ;;  %v1040_v9 = vmul.f32 %v2964_v42, %v1003_v7  ;;  %v4185_v4 = vld [vmem:[#allocation37_spill] sm:$0xff] }
 0x2f3   :  { %v1004_v50 = vsel %vm80_vm1, %v3458_v24, %v976_v43  ;;  %v1000_v51 = vsel %vm80_vm1, %v976_v43, %v3464_v0 }
 0x2f4   :  { %v990_v27 = vpop.permute.xlu0 %989  ;;  %v1044_v23 = vmul.f32 %v2964_v42, %v1004_v50  ;;  %1832 = vmatpush1.bf16.msra.mxu0 %v949_v60  ;;  %1913 = vmatprep.subr.bf16.mxu1 %v952_v18  ;;  %v999_v42 = vsel %vm80_vm1, %v974_v35, %v3456_v36  ;;  %v1045_v3 = vmul.f32 %v2974_v53, %v1000_v51 }
 0x2f5   :  { %v995_v61 = vsel %vm80_vm1, %v3456_v36, %v990_v27  ;;  %v1007_v55 = vsel %vm80_vm1, %v990_v27, %v3450_v45  ;;  %1833 = vmatprep.subr.bf16.mxu0 %v4177_v12  ;;  %1914 = vmatpush1.bf16.msra.mxu1 %v951_v57  ;;  %v1041_v41 = vmul.f32 %v2974_v53, %v999_v42 }
 0x2f6   :  { %1915 = vmatprep.subr.bf16.mxu1 %v4178_v8  ;;  %v992_v54 = vpop.permute.xlu1 %991  ;;  %v1052_v2 = vpack.c.bf16 %v1044_v23, %v1040_v9  ;;  %v1039_v11 = vmul.f32 %v4179_v5, %v1007_v55  ;;  %v1042_v36 = vmul.f32 %v4180_v63, %v995_v61  ;;  %v4188_v57 = vpack.c.bf16 %v3092_v26, %v3086_v62  ;;  %v4190_v55 = vld [vmem:[#allocation40_spill] sm:$0xff]  ;;  %v4191_v62 = vld [vmem:[#allocation43_spill] sm:$0xff] }
 0x2f7   :  { %v996_v45 = vsel %vm80_vm1, %v3464_v0, %v992_v54  ;;  %v1008_v49 = vsel %vm80_vm1, %v992_v54, %v3458_v24  ;;  %v4184_v24 = vld [vmem:[#allocation38_spill] sm:$0xff]  ;;  %v1053_v59 = vpack.c.bf16 %v1045_v3, %v1041_v41  ;;  %v4189_v51 = vpack.c.bf16 %v3136_v48, %v3130_v37  ;;  %v4192_v8 = vld [vmem:[#allocation44_spill] sm:$0xff]  ;;  %v4194_v54 = vld [vmem:[#allocation49_spill] sm:$0xff] }
 0x2f8   :  { %v1076_v19 = vpop.permute.xlu0 %1075  ;;  %v1043_v35 = vmul.f32 %v4179_v5, %v1008_v49  ;;  %v1046_v1 = vmul.f32 %v4180_v63, %v996_v45  ;;  %1834 = vmatpush1.bf16.msra.mxu0 %v4183_v39  ;;  %v4186_v25 = vpack.c.bf16 %v4184_v24, %v4185_v4  ;;  %v4193_v48 = vld [vmem:[#allocation50_spill] sm:$0xff]  ;;  %v4197_v45 = vld [vmem:[#allocation45_spill] sm:$0xff]  ;;  %v4199_v39 = vld [vmem:[#allocation47_spill] sm:$0xff] }
 0x2f9   :  { %v1105_v0 = vsel %vm136_vm3, %v3462_v16, %v1076_v19  ;;  %1835 = vmatprep.subr.bf16.mxu0 %v1052_v2  ;;  %v1101_v9 = vsel %vm136_vm3, %v1076_v19, %v3466_v34  ;;  %v4195_v2 = vpack.c.bf16 %v4193_v48, %v4194_v54  ;;  %v4215_v54 = vld [vmem:[#allocation32_spill] sm:$0xff] }
 0x2fa   :  { %1916 = vmatpush1.bf16.msra.mxu1 %v4186_v25  ;;  %v1051_v44 = vpack.c.bf16 %v1043_v35, %v1039_v11  ;;  %v1078_v46 = vpop.permute.xlu1 %1077  ;;  %v1054_v52 = vpack.c.bf16 %v1046_v1, %v1042_v36  ;;  %v1142_v53 = vmul.f32 %v4187_v28, %v1105_v0  ;;  %v1143_v3 = vmul.f32 %v4190_v55, %v1101_v9  ;;  %v4207_v9 = vld [vmem:[#allocation57_spill] sm:$0xff] }
 0x2fb   :  { %v1106_v7 = vsel %vm136_vm3, %v3468_v38, %v1078_v46  ;;  %v1102_v27 = vsel %vm136_vm3, %v1078_v46, %v3472_v29 }
 0x2fc   :  { %v1092_v31 = vpop.permute.xlu0 %1091  ;;  %v1146_v60 = vmul.f32 %v4187_v28, %v1106_v7  ;;  %1836 = vmatpush1.bf16.msra.mxu0 %v1051_v44  ;;  %1917 = vmatprep.subr.bf16.mxu1 %v1054_v52  ;;  %v1147_v12 = vmul.f32 %v4190_v55, %v1102_v27  ;;  %v1284_v44 = vrot.slane %v2118_v17, %v2201_v14  ;;  %v4212_v55 = vld [vmem:[#allocation14_spill] sm:$0xff] }
 0x2fd   :  { %v1097_v43 = vsel %vm136_vm3, %v3466_v34, %v1092_v31  ;;  %v1109_v18 = vsel %vm136_vm3, %v1092_v31, %v3462_v16  ;;  %1837 = vmatprep.subr.bf16.mxu0 %v4188_v57  ;;  %v4201_v52 = vpack.c.bf16 %v3215_v33, %v3209_v30  ;;  %v4205_v30 = vld [vmem:[#allocation52_spill] sm:$0xff] }
 0x2fe   :  { %1918 = vmatpush1.bf16.msra.mxu1 %v1053_v59  ;;  %v1094_v23 = vpop.permute.xlu1 %1093  ;;  %v1154_v61 = vpack.c.bf16 %v1146_v60, %v1142_v53  ;;  %v1141_v42 = vmul.f32 %v4191_v62, %v1109_v18  ;;  %v1144_v34 = vmul.f32 %v4192_v8, %v1097_v43  ;;  %v1155_v35 = vpack.c.bf16 %v1147_v12, %v1143_v3  ;;  %v4203_v53 = vld [vmem:[#allocation48_spill] sm:$0xff]  ;;  %v4204_v60 = vld [vmem:[#allocation51_spill] sm:$0xff] }
 0x2ff   :  { %1919 = vmatprep.subr.bf16.mxu1 %v4189_v51  ;;  %v1098_v16 = vsel %vm136_vm3, %v3472_v29, %v1094_v23  ;;  %v1110_v26 = vsel %vm136_vm3, %v1094_v23, %v3468_v38  ;;  %v4196_v38 = vld [vmem:[#allocation46_spill] sm:$0xff]  ;;  %v1290_v12 = vmul.f32 %v1276_v56, %v4212_v55 }
 0x300   :  { %v1178_v50 = vpop.permute.xlu0 %1177  ;;  %v1145_v19 = vmul.f32 %v4191_v62, %v1110_v26  ;;  %v1148_v37 = vmul.f32 %v4192_v8, %v1098_v16  ;;  %1838 = vmatpush1.bf16.msra.mxu0 %v4195_v2  ;;  %v4198_v49 = vpack.c.bf16 %v4196_v38, %v4197_v45  ;;  %v4209_v23 = vld [vmem:[#allocation54_spill] sm:$0xff]  ;;  %v1302_v2 = vmul.f32 %v1276_v56, %v4215_v54  ;;  %v4245_v54 = vld [vmem:[#allocation69_spill] sm:$0xff] }
 0x301   :  { %v1207_v29 = vsel %vm180_vm0, %v3470_v47, %v1178_v50  ;;  %1839 = vmatprep.subr.bf16.mxu0 %v1154_v61  ;;  %v1203_v46 = vsel %vm180_vm0, %v1178_v50, %v3474_v15  ;;  %v4206_v50 = vld [vmem:[#allocation58_spill] sm:$0xff]  ;;  %v4210_v61 = vld [vmem:[#allocation53_spill] sm:$0xff] }
 0x302   :  { %1920 = vmatpush1.bf16.msra.mxu1 %v4198_v49  ;;  %v1153_v11 = vpack.c.bf16 %v1145_v19, %v1141_v42  ;;  %v1180_v63 = vpop.permute.xlu1 %1179  ;;  %v1156_v36 = vpack.c.bf16 %v1148_v37, %v1144_v34  ;;  %v1244_v41 = vmul.f32 %v4199_v39, %v1207_v29  ;;  %v4208_v51 = vpack.c.bf16 %v4206_v50, %v4207_v9  ;;  %v4213_v42 = vld [vmem:[#allocation16_spill] sm:$0xff]  ;;  %v4214_v37 = vld [vmem:[#allocation29_spill] sm:$0xff]  ;;  %v4217_v45 = vld [vmem:[#allocation34_spill] sm:$0xff] }
 0x303   :  { %v1208_v1 = vsel %vm180_vm0, %v3476_v13, %v1180_v63  ;;  %v1204_v0 = vsel %vm180_vm0, %v1180_v63, %v3480_v21  ;;  %v1292_v8 = vmul.f32 %v1284_v44, %v4213_v42  ;;  %v1298_v48 = vmul.f32 %v1276_v56, %v4214_v37  ;;  %v4216_v29 = vld [vmem:[#allocation33_spill] sm:$0xff]  ;;  %v4235_v50 = vld [vmem:[#allocation70_spill] sm:$0xff]  ;;  %v4236_v9 = vld [vmem:[#allocation68_spill] sm:$0xff] }
 0x304   :  { %v1194_v5 = vpop.permute.xlu0 %1193  ;;  %v1248_v24 = vmul.f32 %v4199_v39, %v1208_v1  ;;  %1840 = vmatpush1.bf16.msra.mxu0 %v1153_v11  ;;  %1921 = vmatprep.subr.bf16.mxu1 %v1156_v36  ;;  %v1249_v20 = vmul.f32 %v4203_v53, %v1204_v0  ;;  %v1300_v38 = vmul.f32 %v1284_v44, %v4216_v29  ;;  %v4218_v63 = vld [vmem:[#allocation21_spill] sm:$0xff]  ;;  %v4219_v36 = vld [vmem:[#allocation8_spill] sm:$0xff] }
 0x305   :  { %v1199_v4 = vsel %vm180_vm0, %v3474_v15, %v1194_v5  ;;  %v1211_v25 = vsel %vm180_vm0, %v1194_v5, %v3470_v47  ;;  %1841 = vmatprep.subr.bf16.mxu0 %v4200_v6  ;;  %v4202_v47 = vld [vmem:[#allocation15_spill] sm:$0xff]  ;;  %v1296_v15 = vmul.f32 %v1284_v44, %v2628_v32  ;;  %v1304_v49 = vmul.f32 %v1284_v44, %v4217_v45  ;;  %v4220_v1 = vld [vmem:[#allocation24_spill] sm:$0xff]  ;;  %v4225_v6 = vld [vmem:[#allocation9_spill] sm:$0xff] }
 0x306   :  { %1922 = vmatpush1.bf16.msra.mxu1 %v1155_v35  ;;  %v1196_v59 = vpop.permute.xlu1 %1195  ;;  %v1256_v7 = vpack.c.bf16 %v1248_v24, %v1244_v41  ;;  %v1294_v28 = vmul.f32 %v1276_v56, %v4202_v47  ;;  %v1243_v43 = vmul.f32 %v4204_v60, %v1211_v25  ;;  %v1246_v33 = vmul.f32 %v4205_v30, %v1199_v4  ;;  %v4221_v56 = vld [vmem:[#allocation18_spill] sm:$0xff]  ;;  %v4222_v41 = vld [vmem:[#allocation11_spill] sm:$0xff] }
 0x307   :  { %1923 = vmatprep.subr.bf16.mxu1 %v4201_v52  ;;  %v1200_v10 = vsel %vm180_vm0, %v3480_v21, %v1196_v59  ;;  %v1212_v27 = vsel %vm180_vm0, %v1196_v59, %v3476_v13  ;;  %v1245_v21 = vmul.f32 %v4203_v53, %v1203_v46  ;;  %v4211_v13 = vpack.c.bf16 %v4209_v23, %v4210_v61  ;;  %v4223_v24 = vld [vmem:[#allocation22_spill] sm:$0xff]  ;;  %v4227_v52 = vld [vmem:[#allocation12_spill] sm:$0xff]  ;;  %v4228_v59 = vld [vmem:[#allocation13_spill] sm:$0xff] }
 0x308   :  { %v3665_v31 = vpop.permute.xlu0 %1529  ;;  %v1247_v18 = vmul.f32 %v4204_v60, %v1212_v27  ;;  %v1250_v57 = vmul.f32 %v4205_v30, %v1200_v10  ;;  %1842 = vmatpush1.bf16.msra.mxu0 %v4208_v51  ;;  %v1306_v19 = vpack.c.bf16 %v1294_v28, %v1290_v12  ;;  %v1308_v3 = vpack.c.bf16 %v1296_v15, %v1292_v8  ;;  %v4224_v25 = vld [vmem:[#allocation10_spill] sm:$0xff]  ;;  %v4230_v10 = vld [vmem:[#allocation91_spill] sm:$0xff]  ;;  %v4231_v15 = vld [vmem:[#allocation92_spill] sm:$0xff] }
 0x309   :  { %1843 = vmatprep.subr.bf16.mxu0 %v1256_v7  ;;  %v1257_v34 = vpack.c.bf16 %v1249_v20, %v1245_v21  ;;  %v1297_v35 = vmul.f32 %v4219_v36, %v4218_v63  ;;  %v1301_v17 = vmul.f32 %v4219_v36, %v4220_v1  ;;  %v1310_v39 = vpack.c.bf16 %v1302_v2, %v1298_v48  ;;  %v4233_v30 = vld [vmem:[#allocation62_spill] sm:$0xff]  ;;  %v4238_v21 = vld [vmem:[#allocation93_spill] sm:$0xff]  ;;  %v4239_v61 = vld [vmem:[#allocation95_spill] sm:$0xff] }
 0x30a   :  { %1924 = vmatpush1.bf16.msra.mxu1 %v4211_v13  ;;  %v1255_v16 = vpack.c.bf16 %v1247_v18, %v1243_v43  ;;  %v3695_v26 = vpop.permute.xlu1 %1531  ;;  %v1258_v62 = vpack.c.bf16 %v1250_v57, %v1246_v33  ;;  %v1299_v0 = vmul.f32 %v4222_v41, %v4221_v56  ;;  %v1303_v4 = vmul.f32 %v4222_v41, %v4223_v24  ;;  %v4232_v43 = vld [vmem:[#allocation64_spill] sm:$0xff]  ;;  %v4242_v8 = vld [vmem:[#allocation63_spill] sm:$0xff]  ;;  %v4249_v36 = vld [vmem:[#allocation73_spill] sm:$0xff] }
 0x30b   :  { %v4226_v44 = vpack.c.bf16 %v4224_v25, %v4225_v6  ;;  %v1312_v46 = vpack.c.bf16 %v1304_v49, %v1300_v38  ;;  %v4229_v7 = vpack.c.bf16 %v4227_v52, %v4228_v59  ;;  %v1309_v53 = vpack.c.bf16 %v1301_v17, %v1297_v35  ;;  %v4241_v12 = vld [vmem:[#allocation56_spill] sm:$0xff]  ;;  %v4246_v2 = vld [vmem:[#allocation67_spill] sm:$0xff] }
 0x30c   :  { %v1334_v32 = vpop.permute.xlu0 %1333  ;;  %1844 = vmatpush1.bf16.msra.mxu0 %v1255_v16  ;;  %1925 = vmatprep.subr.bf16.mxu1 %v1258_v62  ;;  %v1311_v20 = vpack.c.bf16 %v1303_v4, %v1299_v0  ;;  %v4234_v33 = vpack.c.bf16 %v4232_v43, %v4233_v30  ;;  %v4237_v51 = vpack.c.bf16 %v4235_v50, %v4236_v9  ;;  %v4248_v63 = vld [vmem:[#allocation7_spill] sm:$0xff]  ;;  %v4251_v41 = vld [vmem:[#allocation60_spill] sm:$0xff]  ;;  %v4260_v9 = vld [vmem:[#allocation97_spill] sm:$0xff] }
 0x30d   :  { %1845 = vmatprep.subr.bf16.mxu0 %v1306_v19  ;;  %v1359_v27 = vsel %vm271_vm4, %v1334_v32, %v4230_v10  ;;  %v1363_v60 = vsel %vm271_vm4, %v4231_v15, %v1334_v32  ;;  %v4240_v32 = vld [vmem:[#allocation55_spill] sm:$0xff]  ;;  %v3754_v35 = vrot.slane %v4249_v36, %v4248_v63  ;;  %v3758_v1 = vrot.slane %v4249_v36, %v2201_v14  ;;  %v4252_v25 = vld [vmem:[#allocation28_spill] sm:$0xff] }
 0x30e   :  { %1926 = vmatpush1.bf16.msra.mxu1 %v1257_v34  ;;  %v1552_v11 = vpop.permute.xlu1 %1551  ;;  %v1399_v55 = vmul.f32 %v4240_v32, %v1363_v60  ;;  %v1400_v16 = vmul.f32 %v4241_v12, %v1359_v27  ;;  %v4243_v34 = vld [vmem:[#allocation61_spill] sm:$0xff]  ;;  %v3772_v6 = vrot.slane %v4252_v25, %v4248_v63  ;;  %v4254_v59 = vld [vmem:[#allocation96_spill] sm:$0xff]  ;;  %v4257_v60 = vld [vmem:[#allocation75_spill] sm:$0xff] }
 0x30f   :  { %1927 = vmatprep.subr.bf16.mxu1 %v1308_v3  ;;  %v4244_v19 = vpack.c.bf16 %v4242_v8, %v4243_v34  ;;  %v4247_v3 = vpack.c.bf16 %v4245_v54, %v4246_v2  ;;  %v4266_v34 = vld [vmem:[#allocation76_spill] sm:$0xff]  ;;  %v4271_v63 = vld [vmem:[#allocation81_spill] sm:$0xff] }
 0x310   :  { %v1350_v5 = vpop.permute.xlu0 %1349  ;;  %1846 = vmatpush1.bf16.msra.mxu0 %v4226_v44  ;;  %v3776_v44 = vrot.slane %v4252_v25, %v2201_v14  ;;  %v4269_v54 = vld [vmem:[#allocation72_spill] sm:$0xff] }
 0x311   :  { %1847 = vmatprep.subr.bf16.mxu0 %v1310_v39  ;;  %v1355_v37 = vsel %vm271_vm4, %v4230_v10, %v1350_v5  ;;  %v1367_v48 = vsel %vm271_vm4, %v1350_v5, %v4231_v15  ;;  %v4250_v39 = vld [vmem:[#allocation59_spill] sm:$0xff]  ;;  %v4256_v15 = vld [vmem:[#allocation77_spill] sm:$0xff] }
 0x312   :  { %1928 = vmatpush1.bf16.msra.mxu1 %v4229_v7  ;;  %v3716_v28 = vpop.permute.xlu1 %1653  ;;  %v1401_v56 = vmul.f32 %v4250_v39, %v1355_v37  ;;  %v1402_v0 = vmul.f32 %v4251_v41, %v1367_v48  ;;  %v4258_v43 = vpack.c.bf16 %v4256_v15, %v4257_v60 }
 0x313   :  { %1929 = vmatprep.subr.bf16.mxu1 %v1312_v46  ;;  %v4253_v46 = vld [vmem:[#allocation94_spill] sm:$0xff] }
 0x314   :  { %v1436_v47 = vpop.permute.xlu0 %1435  ;;  %1848 = vmatpush1.bf16.msra.mxu0 %v1309_v53 }
 0x315   :  { %1849 = vmatprep.subr.bf16.mxu0 %v4234_v33  ;;  %v1461_v52 = vsel %vm327_vm6, %v1436_v47, %v4253_v46  ;;  %v1465_v7 = vsel %vm327_vm6, %v4254_v59, %v1436_v47 }
 0x316   :  { %1930 = vmatpush1.bf16.msra.mxu1 %v1311_v20  ;;  %v1336_v57 = vpop.permute.xlu1 %1335  ;;  %v4255_v20 = vld [vmem:[#allocation27_spill] sm:$0xff] }
 0x317   :  { %1931 = vmatprep.subr.bf16.mxu1 %v4237_v51  ;;  %v1360_v23 = vsel %vm271_vm4, %v1336_v57, %v4238_v21  ;;  %v1364_v13 = vsel %vm271_vm4, %v4239_v61, %v1336_v57  ;;  %v1558_v10 = vsel %vm371_vm5, %v4255_v20, %v1552_v11  ;;  %v4259_v57 = vld [vmem:[#allocation30_spill] sm:$0xff] }
 0x318   :  { %v1452_v18 = vpop.permute.xlu0 %1451  ;;  %v1403_v62 = vmul.f32 %v4240_v32, %v1364_v13  ;;  %v1404_v42 = vmul.f32 %v4241_v12, %v1360_v23  ;;  %1850 = vmatpush1.bf16.msra.mxu0 %v4244_v19  ;;  %v1570_v47 = vsel %vm371_vm5, %v1552_v11, %v4259_v57  ;;  %v4263_v32 = vld [vmem:[#allocation66_spill] sm:$0xff] }
 0x319   :  { %v1457_v27 = vsel %vm327_vm6, %v4253_v46, %v1452_v18  ;;  %v1469_v50 = vsel %vm327_vm6, %v1452_v18, %v4254_v59  ;;  %v4264_v18 = vld [vmem:[#allocation71_spill] sm:$0xff]  ;;  %v4267_v19 = vld [vmem:[#allocation74_spill] sm:$0xff]  ;;  %v1602_v59 = vmul.f32 %v3758_v1, %v1570_v47 }
 0x31a   :  { %1932 = vmatpush1.bf16.msra.mxu1 %v4247_v3  ;;  %v1411_v38 = vpack.c.bf16 %v1403_v62, %v1399_v55  ;;  %v1352_v45 = vpop.permute.xlu1 %1351  ;;  %v1412_v49 = vpack.c.bf16 %v1404_v42, %v1400_v16  ;;  %v1502_v55 = vmul.f32 %v4263_v32, %v1461_v52  ;;  %v3810_v16 = vmul.f32 %v3754_v35, %v1558_v10  ;;  %v4265_v42 = vld [vmem:[#allocation26_spill] sm:$0xff]  ;;  %v4275_v52 = vld [vmem:[#allocation19_spill] sm:$0xff] }
 0x31b   :  { %v1356_v5 = vsel %vm271_vm4, %v4238_v21, %v1352_v45  ;;  %v1368_v17 = vsel %vm271_vm4, %v1352_v45, %v4239_v61  ;;  %v4261_v21 = vld [vmem:[#allocation99_spill] sm:$0xff]  ;;  %v4262_v61 = vld [vmem:[#allocation65_spill] sm:$0xff]  ;;  %v1503_v62 = vmul.f32 %v4264_v18, %v1457_v27  ;;  %v4268_v37 = vpack.c.bf16 %v4266_v34, %v4267_v19  ;;  %v4277_v20 = vld [vmem:[#allocation78_spill] sm:$0xff] }
 0x31c   :  { %v1538_v29 = vpop.permute.xlu0 %1537  ;;  %v1405_v24 = vmul.f32 %v4250_v39, %v1356_v5  ;;  %v1406_v4 = vmul.f32 %v4251_v41, %v1368_v17  ;;  %1851 = vmatprep.subr.bf16.mxu0 %v1412_v49  ;;  %v1501_v13 = vmul.f32 %v4262_v61, %v1465_v7  ;;  %v1504_v2 = vmul.f32 %v4269_v54, %v1469_v50  ;;  %v4270_v49 = vld [vmem:[#allocation83_spill] sm:$0xff]  ;;  %v4273_v17 = vld [vmem:[#allocation98_spill] sm:$0xff]  ;;  %v4282_v50 = vld [vmem:[#allocation88_spill] sm:$0xff] }
 0x31d   :  { %1852 = vmatpush1.bf16.msra.mxu0 %v1411_v38  ;;  %v1567_v3 = vsel %vm371_vm5, %v3665_v31, %v1538_v29  ;;  %v4272_v36 = vpack.c.bf16 %v4270_v49, %v4271_v63  ;;  %v1563_v39 = vsel %vm371_vm5, %v1538_v29, %v4273_v17  ;;  %v4276_v7 = vld [vmem:[#allocation23_spill] sm:$0xff]  ;;  %v4278_v27 = vld [vmem:[#allocation82_spill] sm:$0xff] }
 0x31e   :  { %v1413_v14 = vpack.c.bf16 %v1405_v24, %v1401_v56  ;;  %1853 = vmatprep.subr.bf16.mxu0 %v4258_v43  ;;  %v1438_v30 = vpop.permute.xlu1 %1437  ;;  %v1414_v33 = vpack.c.bf16 %v1406_v4, %v1402_v0  ;;  %v4274_v56 = vld [vmem:[#allocation25_spill] sm:$0xff]  ;;  %v1603_v10 = vmul.f32 %v4277_v20, %v1567_v3  ;;  %v4281_v43 = vld [vmem:[#allocation79_spill] sm:$0xff]  ;;  %v4283_v47 = vld [vmem:[#allocation86_spill] sm:$0xff] }
 0x31f   :  { %v1462_v51 = vsel %vm327_vm6, %v1438_v30, %v4260_v9  ;;  %v1466_v23 = vsel %vm327_vm6, %v4261_v21, %v1438_v30  ;;  %v1604_v30 = vmul.f32 %v4281_v43, %v1563_v39 }
 0x320   :  { %v1550_v53 = vpop.permute.xlu0 %1549  ;;  %v1505_v12 = vmul.f32 %v4262_v61, %v1466_v23  ;;  %v1506_v11 = vmul.f32 %v4263_v32, %v1462_v51  ;;  %1933 = vmatprep.subr.bf16.mxu1 %v1414_v33  ;;  %v4285_v23 = vld [vmem:[#allocation17_spill] sm:$0xff]  ;;  %v4286_v32 = vld [vmem:[#allocation100_spill] sm:$0xff] }
 0x321   :  { %v1569_v8 = vsel %vm371_vm5, %v1550_v53, %v4265_v42  ;;  %1854 = vmatpush1.bf16.msra.mxu0 %v4268_v37  ;;  %1934 = vmatpush1.bf16.msra.mxu1 %v1413_v14  ;;  %v1557_v41 = vsel %vm371_vm5, %v4274_v56, %v1550_v53  ;;  %v1672_v53 = vsel %vm427_vm7, %v3716_v28, %v4276_v7  ;;  %v4279_v14 = vld [vmem:[#allocation80_spill] sm:$0xff] }
 0x322   :  { %v1513_v38 = vpack.c.bf16 %v1505_v12, %v1501_v13  ;;  %v1454_v45 = vpop.permute.xlu1 %1453  ;;  %1935 = vmatprep.subr.bf16.mxu1 %v4272_v36  ;;  %v1514_v5 = vpack.c.bf16 %v1506_v11, %v1502_v55  ;;  %v1598_v4 = vmul.f32 %v3758_v1, %v1569_v8  ;;  %v4280_v15 = vpack.c.bf16 %v4278_v27, %v4279_v14  ;;  %v4287_v8 = vld [vmem:[#allocation20_spill] sm:$0xff]  ;;  %v4294_v27 = vld [vmem:[#allocation6_spill] sm:$0xff] }
 0x323   :  { %v1458_v0 = vsel %vm327_vm6, %v4260_v9, %v1454_v45  ;;  %v1470_v24 = vsel %vm327_vm6, %v1454_v45, %v4261_v21  ;;  %v1597_v33 = vmul.f32 %v3754_v35, %v1557_v41  ;;  %v4284_v9 = vpack.c.bf16 %v4282_v50, %v4283_v47  ;;  %v4291_v41 = vld [vmem:[#allocation84_spill] sm:$0xff] }
 0x324   :  { %v1652_v48 = vpop.permute.xlu0 %1651  ;;  %v1507_v25 = vmul.f32 %v4264_v18, %v1458_v0  ;;  %v1508_v46 = vmul.f32 %v4269_v54, %v1470_v24  ;;  %1855 = vmatprep.subr.bf16.mxu0 %v1514_v5  ;;  %v1614_v42 = vpack.c.bf16 %v1602_v59, %v1598_v4  ;;  %v1660_v34 = vsel %vm427_vm7, %v4287_v8, %v3716_v28  ;;  %v4289_v54 = vld [vmem:[#allocation85_spill] sm:$0xff] }
 0x325   :  { %v1671_v29 = vsel %vm427_vm7, %v1652_v48, %v4275_v52  ;;  %1856 = vmatpush1.bf16.msra.mxu0 %v1513_v38  ;;  %1936 = vmatpush1.bf16.msra.mxu1 %v4280_v15  ;;  %v1659_v61 = vsel %vm427_vm7, %v4285_v23, %v1652_v48  ;;  %v1704_v19 = vmul.f32 %v3776_v44, %v1672_v53  ;;  %v4288_v48 = vld [vmem:[#allocation87_spill] sm:$0xff]  ;;  %v4292_v4 = vld [vmem:[#allocation89_spill] sm:$0xff] }
 0x326   :  { %v1515_v57 = vpack.c.bf16 %v1507_v25, %v1503_v62  ;;  %1857 = vmatprep.subr.bf16.mxu0 %v4284_v9  ;;  %v1540_v51 = vpop.permute.xlu1 %1539  ;;  %v1516_v21 = vpack.c.bf16 %v1508_v46, %v1504_v2  ;;  %v1700_v13 = vmul.f32 %v3776_v44, %v1671_v29  ;;  %v4290_v2 = vpack.c.bf16 %v4288_v48, %v4289_v54  ;;  %v4293_v29 = vld [vmem:[#allocation90_spill] sm:$0xff]  ;;  %v1805_v23 = vld [vmem:[%s3945_s3 + $0x118] sm:$0xf] }
 0x327   :  { %v1564_v55 = vsel %vm371_vm5, %v1540_v51, %v4286_v32  ;;  %v1568_v12 = vsel %vm371_vm5, %v3695_v26, %v1540_v51  ;;  %v1613_v38 = vpack.c.bf16 %v3810_v16, %v1597_v33  ;;  %v1699_v45 = vmul.f32 %v3772_v6, %v1659_v61 }
 0x328   :  { %v1554_v60 = vpop.permute.xlu0 %1553  ;;  %v1607_v11 = vmul.f32 %v4277_v20, %v1568_v12  ;;  %v1608_v18 = vmul.f32 %v4281_v43, %v1564_v55  ;;  %1937 = vmatprep.subr.bf16.mxu1 %v1516_v21  ;;  %v1703_v24 = vmul.f32 %v3772_v6, %v1660_v34  ;;  %v1802_v43 = vld [vmem:[%s3945_s3 + $0x100] sm:$0xf] }
 0x329   :  { %v1559_v62 = vsel %vm371_vm5, %v4273_v17, %v1554_v60  ;;  %v1571_v37 = vsel %vm371_vm5, %v1554_v60, %v3665_v31  ;;  %1858 = vmatpush1.bf16.msra.mxu0 %v4290_v2  ;;  %1938 = vmatpush1.bf16.msra.mxu1 %v1515_v57  ;;  %v1716_v17 = vpack.c.bf16 %v1704_v19, %v1700_v13  ;;  %v4295_v60 = vmov 0  }
 0x32a   :  { %v1615_v49 = vpack.c.bf16 %v1607_v11, %v1603_v10  ;;  %v1556_v63 = vpop.permute.xlu1 %1555  ;;  %1939 = vmatprep.subr.bf16.mxu1 %v1614_v42  ;;  %v1616_v28 = vpack.c.bf16 %v1608_v18, %v1604_v30  ;;  %v1605_v36 = vmul.f32 %v3754_v35, %v1559_v62  ;;  %v1606_v39 = vmul.f32 %v3758_v1, %v1571_v37  ;;  %v1803_v30 = vld [vmem:[%s3945_s3 + $0x108] sm:$0xf]  ;;  %v4296_v18 = vld [vmem:[#allocation4_spill] sm:$0xff] }
 0x32b   :  { %v1560_v31 = vsel %vm371_vm5, %v4286_v32, %v1556_v63  ;;  %v1572_v5 = vsel %vm371_vm5, %v1556_v63, %v3695_v26  ;;  %v2119_v32 = vld [vmem:[%s3944_s0] sm:$0xff]  ;;  %v4297_v63 = vld [vmem:[#allocation5_spill] sm:$0xff] }
 0x32c   :  { %v1656_v3 = vpop.permute.xlu0 %1655  ;;  %v1609_v16 = vmul.f32 %v3754_v35, %v1560_v31  ;;  %v1610_v56 = vmul.f32 %v3758_v1, %v1572_v5  ;;  %1859 = vmatprep.subr.bf16.mxu0 %v1616_v28  ;;  %v1715_v35 = vpack.c.bf16 %v1703_v24, %v1699_v45 }
 0x32d   :  { %v1661_v0 = vsel %vm427_vm7, %v4291_v41, %v1656_v3  ;;  %v1673_v25 = vsel %vm427_vm7, %v1656_v3, %v4292_v4  ;;  %1860 = vmatpush1.bf16.msra.mxu0 %v1615_v49  ;;  %1940 = vmatpush1.bf16.msra.mxu1 %v1613_v38  ;;  %v2120_v38 = vld [vmem:[%s3944_s0 + $0x8] sm:$0xff] }
 0x32e   :  { %v1617_v26 = vpack.c.bf16 %v1609_v16, %v1605_v36  ;;  %1952 = vmatprep.subr.bf16.mxu0 %v1716_v17  ;;  %v1658_v46 = vpop.permute.xlu1 %1657  ;;  %v1618_v52 = vpack.c.bf16 %v1610_v56, %v1606_v39  ;;  %v1707_v1 = vmul.f32 %v3772_v6, %v1661_v0  ;;  %v1708_v53 = vmul.f32 %v3776_v44, %v1673_v25 }
 0x32f   :  { %v1662_v59 = vsel %vm427_vm7, %v4293_v29, %v1658_v46  ;;  %v1674_v7 = vsel %vm427_vm7, %v1658_v46, %v3433_v58 }
 0x330   :  { %v1711_v20 = vmul.f32 %v3772_v6, %v1662_v59  ;;  %v1712_v10 = vmul.f32 %v3776_v44, %v1674_v7  ;;  %1862 = vmatmul.mubr.bf16.vlgmr.msra.gmra.mrb[8].mxu0 %v4294_v27  ;;  %1941 = vmatprep.subr.bf16.mxu1 %v1618_v52 }
 0x331   :  { %1942 = vmatpush1.bf16.msra.mxu1 %v1617_v26  ;;  %1953 = vmatpush1.bf16.msra.mxu0 %v1715_v35 }
 0x332   :  { %v1719_v14 = vpack.c.bf16 %v1711_v20, %v1707_v1  ;;  %v1720_v15 = vpack.c.bf16 %v1712_v10, %v1708_v53  ;;  %1984 = vmatprep.mubr.bf16.mxu0 %v4295_v60 }
 0x334   :  { %1944 = vmatmul.mubr.bf16.vlgmr.msra.gmra.mrb[12].mxu1 %v4294_v27  ;;  %1954 = vmatprep.subr.bf16.mxu0 %v1720_v15 }
 0x335   :  { %1955 = vmatpush1.bf16.msra.mxu0 %v1719_v14 }
 0x338   :  { %2038 = vmatmul.mubr.msk.bf16.vlgmr.msra.gmra.mrb[12].mxu0 %vm1825_vm10, %v3521_v40  ;;  %v1804_v40 = vld [vmem:[%s3945_s3 + $0x110] sm:$0xf] }
 0x3c3   :  { %v1904_v22 = vpop.f32.mrb[8].mxu1 }
 0x3c4   :  { %v1906_v58 = vpop.f32.mrb[9].mxu1 }
 0x3c5   :  { %v1908_v6 = vpop.f32.mrb[10].mxu1 }
 0x3c6   :  { %v1909_v44 = vpop.f32.mrb[11].mxu1 }
 0x403   :  { %v1863_v33 = vpop.f32.mrb[8].mxu0 }
 0x404   :  { %v1864_v57 = vadd.f32 %v1863_v33, %v1802_v43  ;;  %v1865_v50 = vpop.f32.mrb[9].mxu0 }
 0x405   :  { %v1866_v47 = vadd.f32 %v1865_v50, %v1803_v30  ;;  %v1867_v9 = vpop.f32.mrb[10].mxu0 }
 0x406   :  { %v1905_v51 = vadd.f32 %v1904_v22, %v1864_v57  ;;  %v1868_v21 = vpop.f32.mrb[11].mxu0 }
 0x407   :  { %v1907_v61 = vadd.f32 %v1906_v58, %v1866_v47  ;;  %v1945_v13 = vpop.f32.mrb[12].mxu1 }
 0x408   :  { %v1993_v55 = vadd.f32 %v2119_v32, %v1905_v51  ;;  %v1946_v12 = vadd.f32 %v1945_v13, %v1804_v40  ;;  %v1947_v11 = vpop.f32.mrb[13].mxu1 }
 0x409   :  { %v1994_v62 = vadd.f32 %v1907_v61, %v4296_v18  ;;  %v1948_v42 = vadd.f32 %v1947_v11, %v1805_v23  ;;  %v1949_v8 = vpop.f32.mrb[14].mxu1 }
 0x40a   :  { %v1950_v34 = vpop.f32.mrb[15].mxu1 }
 0x40b   :  { %v2001_v19 = vcombine.low %v1993_v55, %v1994_v62  ;;  %v1986_v37 = vpop.f32.mrb[12].mxu0 }
 0x40c   :  { %v1987_v48 = vadd.f32 %v1986_v37, %v1946_v12  ;;  %v1988_v54 = vpop.f32.mrb[13].mxu0 }
 0x40d   :  { %v1989_v2 = vadd.f32 %v1988_v54, %v1948_v42  ;;  %2005 = vst [vmem:[%s3948_s4] sm:$0xff] %v2001_v19  ;;  %v1990_v3 = vpop.f32.mrb[14].mxu0 }
 0x40e   :  { %v1995_v45 = vadd.f32 %v2120_v38, %v1987_v48  ;;  %v1991_v49 = vpop.f32.mrb[15].mxu0 }
 0x40f   :  { %v1996_v28 = vadd.f32 %v1989_v2, %v4297_v63 }
 0x411   :  { %v2002_v36 = vcombine.low %v1995_v45, %v1996_v28 }
 0x413   :  { %2006 = vst [vmem:[%s3948_s4 + $0x8] sm:$0xff] %v2002_v36 }

</bundles_post_ra>
